<compile_context>
chip_gen: v5e
topology: v5e:2x2
jax: 0.10.0
libtpu: 0.0.40
codegen_flags: <defaults>
</compile_context>

<pallas_src>
import jax
import jax.numpy as jnp
from jax import lax
from jax.experimental import pallas as pl
from jax.experimental.pallas import tpu as pltpu

_LANES = 128  # lane-dense output-slab width == padded fused-head width


def _round_up(x, m):
    return ((x + m - 1) // m) * m


# -----------------------------------------------------------------------------
# Pallas kernel (runs once per batch tile)
# -----------------------------------------------------------------------------
def classifier_kernel(hidden_ref, mask_ref, ln_g_ref, ln_b_ref, w_att_ref,
                      w1_ref, b1_ref, w2_ref, b2_ref, wo_ref, bo_ref, out_ref):
    TB, S, D = hidden_ref.shape
    L = out_ref.shape[-1]

    # ---- fused encoder-final LayerNorm: one-pass stats (E[x^2] - mu^2), f32 accum ----
    # TODO(synk): on v6e/v7x the post-LN affine could run in bf16 to halve the largest
    # intermediate; kept in f32 for a single codepath (v5e has no bf16 VPU).
    h = hidden_ref[...].astype(jnp.float32)                           # (TB,S,D)
    mu = jnp.mean(h, axis=-1, keepdims=True)
    var = jnp.mean(h * h, axis=-1, keepdims=True) - mu * mu
    h = (h - mu) * lax.rsqrt(var + 1e-12) * ln_g_ref[...] + ln_b_ref[...]

    # ---- BaseAttention pooling: score -> masked softmax over seq -> weighted sum -----
    # (score bias cancels in softmax -> folded out at parameter prep)
    if S >= 128:
        # MXU path for realistic sequence lengths: D/S contractions on the MXU.
        h_bf = h.astype(jnp.bfloat16)
        w_col = w_att_ref[...].reshape(D, 1).astype(jnp.bfloat16)
        scores = lax.dot_general(h_bf.reshape(TB * S, D), w_col,
                                 (((1,), (0,)), ((), ())),
                                 preferred_element_type=jnp.float32).reshape(TB, S, 1)
    else:
        scores = jnp.sum(h * w_att_ref[...], axis=-1, keepdims=True)  # (TB,S,1)
    # NOTE: an all-zero mask row degenerates to a uniform distribution over the row.
    scores = jnp.where(mask_ref[...] == 0.0, jnp.float32(-1e9), scores)
    scores = scores - jnp.max(scores, axis=1, keepdims=True)          # softmax over seq
    e = jnp.exp(scores)
    inv = pl.reciprocal(jnp.sum(e, axis=1, keepdims=True), approx=True)
    attn_w3 = e * inv                                                 # (TB,S,1)
    attn_w = attn_w3.reshape(TB, S)                                   # lane layout (TB,S)
    if S >= 128:
        applied = jnp.einsum('bs,bsd->bd', attn_w.astype(jnp.bfloat16), h_bf,
                             preferred_element_type=jnp.float32)      # (TB,D) on MXU
    else:
        applied = jnp.sum(h * attn_w3, axis=1)                        # (TB,D) on VPU/XLU

    # ---- MLP: eval-mode BatchNorm folded into bf16 linears, dims lane-padded ---------
    x = jnp.dot(applied.astype(jnp.bfloat16), w1_ref[...],
                preferred_element_type=jnp.float32) + b1_ref[...]     # (TB,512)
    x = jnp.dot(x.astype(jnp.bfloat16), w2_ref[...],
                preferred_element_type=jnp.float32) + b2_ref[...]     # (TB,128)

    # ---- fused output heads: one lane-dense matmul, two masked softmaxes -------------
    logits = jnp.dot(x.astype(jnp.bfloat16), wo_ref[...],
                     preferred_element_type=jnp.float32) + bo_ref[...]  # (TB,L)
    lane = lax.broadcasted_iota(jnp.int32, (TB, L), 1)

    def masked_softmax(z, valid):
        z = jnp.where(valid, z, jnp.float32(-1e30))
        z = z - jnp.max(z, axis=-1, keepdims=True)
        ez = jnp.exp(z)
        return ez / jnp.sum(ez, axis=-1, keepdims=True)   # exact divide (tiny heads)

    out_ref[0] = masked_softmax(logits, lane < 3)                     # head1 -> lanes 0:3
    out_ref[1] = masked_softmax(logits, (lane >= 3) & (lane < 5))     # head2 -> lanes 3:5
    # attention weights row built in registers, single lane-dense store
    if S < L:
        attn_row = jnp.concatenate(
            [attn_w, jnp.zeros((TB, L - S), jnp.float32)], axis=1)
    else:
        attn_row = attn_w
    out_ref[2] = attn_row                                             # weights -> lanes 0:S


# -----------------------------------------------------------------------------
# Wrapper: batch-tiled grid, generation-aware VMEM sizing
# -----------------------------------------------------------------------------
def bert_classifier_head(hidden_pre_bf16, mask3, p):
    """hidden_pre_bf16: (B,S,768) bf16 pre-LayerNorm hidden; mask3: (B,S,1) f32."""
    B, S, D = hidden_pre_bf16.shape
    assert S <= _LANES, "TODO(synk): widen output slab for S > 128"
    H1P = p["w1"].shape[1]
    H2P = p["w2"].shape[1]
    L = p["wo"].shape[1]

    # --- per-generation VMEM budget & batch-tile size ---
    try:
        vmem_cap = int(pltpu.get_tpu_info().vmem_capacity_bytes)
    except Exception:                      # pragma: no cover - conservative fallback
        vmem_cap = 64 << 20                # assume v7x-sized VMEM
    scoped_vmem = int(min(vmem_cap // 2, 48 << 20))
    hidden_budget = scoped_vmem // 3
    # resident bytes per batch row: double-buffered bf16 hidden block + f32 LN copy + temps
    per_row = S * D * (2 * 2 + 4 + 8)
    tb = max(1, hidden_budget // per_row)
    if tb >= B:
        TB = B
    else:
        TB = min(B, max(8, (tb // 8) * 8))  # multiple-of-8 sublane tile
    grid = (pl.cdiv(B, TB),)

    def const_map(ndim):
        return lambda b: (0,) * ndim

    def weight_spec(arr):
        return pl.BlockSpec(arr.shape, const_map(arr.ndim))  # resident, no re-DMA

    cost = pl.CostEstimate(
        flops=int(2 * B * (D * H1P + H1P * H2P + H2P * L) + 10 * B * S * D),
        transcendentals=int(B * (2 * S + 2 * L)),
        bytes_accessed=int(B * S * D * 2 + B * S * 4 + 3 * B * L * 4
                           + 2 * (D * H1P + H1P * H2P + H2P * L) + 8 * D),
    )

    slab = pl.pallas_call(
        classifier_kernel,
        out_shape=jax.ShapeDtypeStruct((3, B, L), jnp.float32),
        grid=grid,
        in_specs=[
            pl.BlockSpec((TB, S, D), lambda b: (b, 0, 0)),   # hidden (pipelined over batch)
            pl.BlockSpec((TB, S, 1), lambda b: (b, 0, 0)),   # mask   (pipelined over batch)
            weight_spec(p["ln_g"]), weight_spec(p["ln_b"]),
            weight_spec(p["w_att"]),
            weight_spec(p["w1"]), weight_spec(p["b1"]),
            weight_spec(p["w2"]), weight_spec(p["b2"]),
            weight_spec(p["wo"]), weight_spec(p["bo"]),
        ],
        out_specs=pl.BlockSpec((3, TB, L), lambda b: (0, b, 0)),
        compiler_params=pltpu.CompilerParams(
            dimension_semantics=("parallel",),   # shards batch tiles across v7x's 2 TCs
            vmem_limit_bytes=scoped_vmem),
        cost_estimate=cost,
    )(hidden_pre_bf16, mask3, p["ln_g"], p["ln_b"], p["w_att"],
      p["w1"], p["b1"], p["w2"], p["b2"], p["wo"], p["bo"])
    return {
        "y_pred1": slab[0, :, 0:3],
        "y_pred2": slab[1, :, 3:5],
        "weights": slab[2, :, 0:S],
    }


# -----------------------------------------------------------------------------
# Parameters (PyTorch-shaped) + one-time kernel-param prep
# (BN fold, head fuse, lane-pad 500->512 / 100->128, bf16 weights)
# -----------------------------------------------------------------------------
def init_params(key, vocab=100, max_pos=64, D=768, H1=500, H2=100):
    ks = jax.random.split(key, 16)
    s = 0.02
    bert = {
        "tok_emb": jax.random.normal(ks[0], (vocab, D), jnp.float32) * s,
        "pos_emb": jax.random.normal(ks[1], (max_pos, D), jnp.float32) * s,
        "ln_g": jnp.ones((D,), jnp.float32),
        "ln_b": jnp.zeros((D,), jnp.float32),
    }
    head = {
        # BaseAttention(768): score linear (D -> 1)
        "w_att": jax.random.normal(ks[2], (1, D), jnp.float32) * s,
        "b_att": jnp.zeros((1, 1), jnp.float32),   # cancels in softmax (shift-invariance)
        # Linear(768,500) + BatchNorm1d(500)  (running stats => eval mode)
        "w1": jax.random.normal(ks[3], (D, H1), jnp.float32) * s,
        "b1": jax.random.normal(ks[4], (1, H1), jnp.float32) * s,
        "bn1_g": jnp.ones((1, H1), jnp.float32),
        "bn1_b": jnp.zeros((1, H1), jnp.float32),
        "bn1_rm": jax.random.normal(ks[5], (1, H1), jnp.float32) * 0.1,
        "bn1_rv": 1.0 + jnp.abs(jax.random.normal(ks[6], (1, H1), jnp.float32)) * 0.1,
        # Linear(500,100) + BatchNorm1d(100)
        "w2": jax.random.normal(ks[7], (H1, H2), jnp.float32) * s,
        "b2": jax.random.normal(ks[8], (1, H2), jnp.float32) * s,
        "bn2_g": jnp.ones((1, H2), jnp.float32),
        "bn2_b": jnp.zeros((1, H2), jnp.float32),
        "bn2_rm": jax.random.normal(ks[9], (1, H2), jnp.float32) * 0.1,
        "bn2_rv": 1.0 + jnp.abs(jax.random.normal(ks[10], (1, H2), jnp.float32)) * 0.1,
        # output1: Linear(100,3); output2: Linear(100,2)
        "wo1": jax.random.normal(ks[11], (H2, 3), jnp.float32) * s,
        "bo1": jax.random.normal(ks[12], (1, 3), jnp.float32) * s,
        "wo2": jax.random.normal(ks[13], (H2, 2), jnp.float32) * s,
        "bo2": jax.random.normal(ks[14], (1, 2), jnp.float32) * s,
    }
    return bert, head


def prepare_kernel_params(bert, head):
    """Run ONCE outside jit: fold eval-mode BatchNorm into the linears, lane-pad the MLP
    dims (500->512, 100->128), fuse + lane-pad the two heads into one (128,128) weight,
    cast the big weights to bf16."""
    def fold_bn(w, b, g, beta, rmean, rvar, eps=1e-5):
        scale = g * lax.rsqrt(rvar + eps)                   # (1,out)
        return w * scale, (b - rmean) * scale + beta

    w1, b1 = fold_bn(head["w1"], head["b1"], head["bn1_g"], head["bn1_b"],
                     head["bn1_rm"], head["bn1_rv"])
    w2, b2 = fold_bn(head["w2"], head["b2"], head["bn2_g"], head["bn2_b"],
                     head["bn2_rm"], head["bn2_rv"])
    D, H1 = w1.shape
    H2 = w2.shape[1]
    H1P = _round_up(H1, _LANES)   # 500 -> 512
    H2P = _round_up(H2, _LANES)   # 100 -> 128
    w1p = jnp.zeros((D, H1P), jnp.float32).at[:, :H1].set(w1)
    b1p = jnp.zeros((1, H1P), jnp.float32).at[:, :H1].set(b1)
    w2p = jnp.zeros((H1P, H2P), jnp.float32).at[:H1, :H2].set(w2)
    b2p = jnp.zeros((1, H2P), jnp.float32).at[:, :H2].set(b2)
    wo = (jnp.zeros((H2P, _LANES), jnp.float32)
          .at[:H2, 0:3].set(head["wo1"]).at[:H2, 3:5].set(head["wo2"]))
    bo = (jnp.zeros((1, _LANES), jnp.float32)
          .at[:, 0:3].set(head["bo1"]).at[:, 3:5].set(head["bo2"]))
    return {
        "ln_g": bert["ln_g"].reshape(1, 1, D),
        "ln_b": bert["ln_b"].reshape(1, 1, D),
        "w_att": head["w_att"].reshape(1, 1, D),
        # b_att is a constant shift of every score => cancels in the seq softmax; dropped.
        "w1": w1p.astype(jnp.bfloat16), "b1": b1p,
        "w2": w2p.astype(jnp.bfloat16), "b2": b2p,
        "wo": wo.astype(jnp.bfloat16), "bo": bo,
    }


@jax.jit
def forward(input_ids, attention_masks, bert_params, kernel_params):
    S = input_ids.shape[1]
    # TODO(synk): deterministic stand-in for the pretrained encoder's last hidden state
    # (token + position embedding); its final LayerNorm is fused into the kernel.
    h_pre = bert_params["tok_emb"][input_ids] + bert_params["pos_emb"][:S][None, :, :]
    return bert_classifier_head(
        h_pre.astype(jnp.bfloat16),
        attention_masks.astype(jnp.float32)[:, :, None],
        kernel_params)


if __name__ == "__main__":
    B, S = 2, 8
    key = jax.random.PRNGKey(0)
    k_ids, k_params = jax.random.split(key)

    input_ids = jax.random.randint(k_ids, (B, S), 0, 100, dtype=jnp.int32)
    attention_masks = jnp.array(
        [[1, 1, 1, 1, 1, 1, 1, 1],
         [1, 1, 1, 1, 1, 0, 0, 0]], dtype=jnp.float32)

    bert_params, head_params = init_params(k_params)
    kernel_params = prepare_kernel_params(bert_params, head_params)

    out = forward(input_ids, attention_masks, bert_params, kernel_params)
    jax.block_until_ready(out)

    y1, y2, w = out["y_pred1"], out["y_pred2"], out["weights"]
    assert y1.shape == (B, 3) and y2.shape == (B, 2) and w.shape == (B, S)
    # head softmaxes use an exact divide -> tight tolerance; pooling softmax keeps the
    # approx EUP reciprocal in the denominator -> loose tolerance; masked positions must
    # get ~0 attention weight.
    assert jnp.allclose(jnp.sum(y1, -1), 1.0, atol=1e-3)
    assert jnp.allclose(jnp.sum(y2, -1), 1.0, atol=1e-3)
    assert jnp.allclose(jnp.sum(w, -1), 1.0, atol=1e-2)
    assert float(jnp.max(w[1, 5:])) < 1e-6
    print("KERNEL_OK")
</pallas_src>

<mosaic_0001>
module attributes {stable_mosaic.version = 11 : i64} {
  func.func @classifier_kernel(%arg0: i32, %arg1: memref<2x8x768xbf16, #tpu.memory_space<vmem>>, %arg2: memref<2x8x1xf32, #tpu.memory_space<vmem>>, %arg3: memref<1x1x768xf32, #tpu.memory_space<vmem>>, %arg4: memref<1x1x768xf32, #tpu.memory_space<vmem>>, %arg5: memref<1x1x768xf32, #tpu.memory_space<vmem>>, %arg6: memref<768x512xbf16, #tpu.memory_space<vmem>>, %arg7: memref<1x512xf32, #tpu.memory_space<vmem>>, %arg8: memref<512x128xbf16, #tpu.memory_space<vmem>>, %arg9: memref<1x128xf32, #tpu.memory_space<vmem>>, %arg10: memref<128x128xbf16, #tpu.memory_space<vmem>>, %arg11: memref<1x128xf32, #tpu.memory_space<vmem>>, %arg12: memref<3x2x128xf32, #tpu.memory_space<vmem>>) attributes {dimension_semantics = [#tpu.dimension_semantics<parallel>], iteration_bounds = array<i64: 1>, scalar_prefetch = 0 : i64, scratch_operands = 0 : i64, tpu.core_type = #tpu.core_type<tc>, window_params = [{transform_indices = @transform_0, window_bounds = array<i64: 2, 8, 768>}, {transform_indices = @transform_1, window_bounds = array<i64: 2, 8, 1>}, {pipeline_mode = #tpu.pipeline_mode<synchronous>, transform_indices = @transform_2, window_bounds = array<i64: 1, 1, 768>}, {pipeline_mode = #tpu.pipeline_mode<synchronous>, transform_indices = @transform_3, window_bounds = array<i64: 1, 1, 768>}, {pipeline_mode = #tpu.pipeline_mode<synchronous>, transform_indices = @transform_4, window_bounds = array<i64: 1, 1, 768>}, {pipeline_mode = #tpu.pipeline_mode<synchronous>, transform_indices = @transform_5, window_bounds = array<i64: 768, 512>}, {pipeline_mode = #tpu.pipeline_mode<synchronous>, transform_indices = @transform_6, window_bounds = array<i64: 1, 512>}, {pipeline_mode = #tpu.pipeline_mode<synchronous>, transform_indices = @transform_7, window_bounds = array<i64: 512, 128>}, {pipeline_mode = #tpu.pipeline_mode<synchronous>, transform_indices = @transform_8, window_bounds = array<i64: 1, 128>}, {pipeline_mode = #tpu.pipeline_mode<synchronous>, transform_indices = @transform_9, window_bounds = array<i64: 128, 128>}, {pipeline_mode = #tpu.pipeline_mode<synchronous>, transform_indices = @transform_10, window_bounds = array<i64: 1, 128>}, {transform_indices = @transform_11, window_bounds = array<i64: 3, 2, 128>}]} {
    %c0 = arith.constant 0 : index
    %c0_0 = arith.constant 0 : index
    %c0_1 = arith.constant 0 : index
    %0 = vector.load %arg1[%c0, %c0_0, %c0_1] : memref<2x8x768xbf16, #tpu.memory_space<vmem>>, vector<2x8x768xbf16>
    %1 = arith.extf %0 : vector<2x8x768xbf16> to vector<2x8x768xf32>
    %cst = arith.constant dense<0.000000e+00> : vector<2x8xf32>
    %2 = vector.multi_reduction <add>, %1, %cst [2] : vector<2x8x768xf32> to vector<2x8xf32>
    %3 = vector.shape_cast %2 : vector<2x8xf32> to vector<2x8x1xf32>
    %cst_2 = arith.constant 7.680000e+02 : f32
    %4 = vector.broadcast %cst_2 : f32 to vector<2x8x1xf32>
    %5 = arith.divf %3, %4 : vector<2x8x1xf32>
    %6 = arith.mulf %1, %1 : vector<2x8x768xf32>
    %cst_3 = arith.constant dense<0.000000e+00> : vector<2x8xf32>
    %7 = vector.multi_reduction <add>, %6, %cst_3 [2] : vector<2x8x768xf32> to vector<2x8xf32>
    %8 = vector.shape_cast %7 : vector<2x8xf32> to vector<2x8x1xf32>
    %cst_4 = arith.constant 7.680000e+02 : f32
    %9 = vector.broadcast %cst_4 : f32 to vector<2x8x1xf32>
    %10 = arith.divf %8, %9 : vector<2x8x1xf32>
    %11 = arith.mulf %5, %5 : vector<2x8x1xf32>
    %12 = arith.subf %10, %11 : vector<2x8x1xf32>
    %13 = vector.broadcast %5 : vector<2x8x1xf32> to vector<2x8x768xf32>
    %14 = arith.subf %1, %13 : vector<2x8x768xf32>
    %cst_5 = arith.constant 9.99999996E-13 : f32
    %15 = vector.broadcast %cst_5 : f32 to vector<2x8x1xf32>
    %16 = arith.addf %12, %15 : vector<2x8x1xf32>
    %17 = math.rsqrt %16 : vector<2x8x1xf32>
    %18 = vector.broadcast %17 : vector<2x8x1xf32> to vector<2x8x768xf32>
    %19 = arith.mulf %14, %18 : vector<2x8x768xf32>
    %c0_6 = arith.constant 0 : index
    %c0_7 = arith.constant 0 : index
    %c0_8 = arith.constant 0 : index
    %20 = vector.load %arg3[%c0_6, %c0_7, %c0_8] : memref<1x1x768xf32, #tpu.memory_space<vmem>>, vector<1x1x768xf32>
    %21 = vector.broadcast %20 : vector<1x1x768xf32> to vector<2x8x768xf32>
    %22 = arith.mulf %19, %21 : vector<2x8x768xf32>
    %c0_9 = arith.constant 0 : index
    %c0_10 = arith.constant 0 : index
    %c0_11 = arith.constant 0 : index
    %23 = vector.load %arg4[%c0_9, %c0_10, %c0_11] : memref<1x1x768xf32, #tpu.memory_space<vmem>>, vector<1x1x768xf32>
    %24 = vector.broadcast %23 : vector<1x1x768xf32> to vector<2x8x768xf32>
    %25 = arith.addf %22, %24 : vector<2x8x768xf32>
    %c0_12 = arith.constant 0 : index
    %c0_13 = arith.constant 0 : index
    %c0_14 = arith.constant 0 : index
    %26 = vector.load %arg5[%c0_12, %c0_13, %c0_14] : memref<1x1x768xf32, #tpu.memory_space<vmem>>, vector<1x1x768xf32>
    %27 = vector.broadcast %26 : vector<1x1x768xf32> to vector<2x8x768xf32>
    %28 = arith.mulf %25, %27 : vector<2x8x768xf32>
    %cst_15 = arith.constant dense<0.000000e+00> : vector<2x8xf32>
    %29 = vector.multi_reduction <add>, %28, %cst_15 [2] : vector<2x8x768xf32> to vector<2x8xf32>
    %30 = vector.shape_cast %29 : vector<2x8xf32> to vector<2x8x1xf32>
    %c0_16 = arith.constant 0 : index
    %c0_17 = arith.constant 0 : index
    %c0_18 = arith.constant 0 : index
    %31 = vector.load %arg2[%c0_16, %c0_17, %c0_18] : memref<2x8x1xf32, #tpu.memory_space<vmem>>, vector<2x8x1xf32>
    %cst_19 = arith.constant 0.000000e+00 : f32
    %32 = vector.broadcast %cst_19 : f32 to vector<2x8x1xf32>
    %33 = arith.cmpf oeq, %31, %32 : vector<2x8x1xf32>
    %cst_20 = arith.constant -1.000000e+09 : f32
    %34 = vector.broadcast %cst_20 : f32 to vector<2x8x1xf32>
    %35 = arith.select %33, %34, %30 : vector<2x8x1xi1>, vector<2x8x1xf32>
    %cst_21 = arith.constant dense<0xFF800000> : vector<2x1xf32>
    %36 = vector.multi_reduction <maximumf>, %35, %cst_21 [1] : vector<2x8x1xf32> to vector<2x1xf32>
    %37 = vector.shape_cast %36 : vector<2x1xf32> to vector<2x1x1xf32>
    %38 = vector.broadcast %37 : vector<2x1x1xf32> to vector<2x8x1xf32>
    %39 = arith.subf %35, %38 : vector<2x8x1xf32>
    %40 = math.exp %39 : vector<2x8x1xf32>
    %cst_22 = arith.constant dense<0.000000e+00> : vector<2x1xf32>
    %41 = vector.multi_reduction <add>, %40, %cst_22 [1] : vector<2x8x1xf32> to vector<2x1xf32>
    %42 = vector.shape_cast %41 : vector<2x1xf32> to vector<2x1x1xf32>
    %43 = tpu.reciprocal %42 {approx = true} : vector<2x1x1xf32> -> vector<2x1x1xf32>
    %44 = vector.broadcast %43 : vector<2x1x1xf32> to vector<2x8x1xf32>
    %45 = arith.mulf %40, %44 : vector<2x8x1xf32>
    %46 = vector.shape_cast %45 : vector<2x8x1xf32> to vector<2x8xf32>
    %47 = vector.broadcast %45 : vector<2x8x1xf32> to vector<2x8x768xf32>
    %48 = arith.mulf %25, %47 : vector<2x8x768xf32>
    %cst_23 = arith.constant dense<0.000000e+00> : vector<2x768xf32>
    %49 = vector.multi_reduction <add>, %48, %cst_23 [1] : vector<2x8x768xf32> to vector<2x768xf32>
    %50 = arith.truncf %49 : vector<2x768xf32> to vector<2x768xbf16>
    %c0_24 = arith.constant 0 : index
    %c0_25 = arith.constant 0 : index
    %51 = vector.load %arg6[%c0_24, %c0_25] : memref<768x512xbf16, #tpu.memory_space<vmem>>, vector<768x512xbf16>
    %cst_26 = arith.constant dense<0.000000e+00> : vector<2x512xf32>
    %52 = tpu.matmul %50, %51, %cst_26 {dimension_numbers = #tpu.dot_dimension_numbers<[1], [0], [0], [1], [0, 0, 1, 1], [], []>} : vector<2x768xbf16>, vector<768x512xbf16>, vector<2x512xf32> -> vector<2x512xf32>
    %c0_27 = arith.constant 0 : index
    %c0_28 = arith.constant 0 : index
    %53 = vector.load %arg7[%c0_27, %c0_28] : memref<1x512xf32, #tpu.memory_space<vmem>>, vector<1x512xf32>
    %54 = vector.broadcast %53 : vector<1x512xf32> to vector<2x512xf32>
    %55 = arith.addf %52, %54 : vector<2x512xf32>
    %56 = arith.truncf %55 : vector<2x512xf32> to vector<2x512xbf16>
    %c0_29 = arith.constant 0 : index
    %c0_30 = arith.constant 0 : index
    %57 = vector.load %arg8[%c0_29, %c0_30] : memref<512x128xbf16, #tpu.memory_space<vmem>>, vector<512x128xbf16>
    %cst_31 = arith.constant dense<0.000000e+00> : vector<2x128xf32>
    %58 = tpu.matmul %56, %57, %cst_31 {dimension_numbers = #tpu.dot_dimension_numbers<[1], [0], [0], [1], [0, 0, 1, 1], [], []>} : vector<2x512xbf16>, vector<512x128xbf16>, vector<2x128xf32> -> vector<2x128xf32>
    %c0_32 = arith.constant 0 : index
    %c0_33 = arith.constant 0 : index
    %59 = vector.load %arg9[%c0_32, %c0_33] : memref<1x128xf32, #tpu.memory_space<vmem>>, vector<1x128xf32>
    %60 = vector.broadcast %59 : vector<1x128xf32> to vector<2x128xf32>
    %61 = arith.addf %58, %60 : vector<2x128xf32>
    %62 = arith.truncf %61 : vector<2x128xf32> to vector<2x128xbf16>
    %c0_34 = arith.constant 0 : index
    %c0_35 = arith.constant 0 : index
    %63 = vector.load %arg10[%c0_34, %c0_35] : memref<128x128xbf16, #tpu.memory_space<vmem>>, vector<128x128xbf16>
    %cst_36 = arith.constant dense<0.000000e+00> : vector<2x128xf32>
    %64 = tpu.matmul %62, %63, %cst_36 {dimension_numbers = #tpu.dot_dimension_numbers<[1], [0], [0], [1], [0, 0, 1, 1], [], []>} : vector<2x128xbf16>, vector<128x128xbf16>, vector<2x128xf32> -> vector<2x128xf32>
    %c0_37 = arith.constant 0 : index
    %c0_38 = arith.constant 0 : index
    %65 = vector.load %arg11[%c0_37, %c0_38] : memref<1x128xf32, #tpu.memory_space<vmem>>, vector<1x128xf32>
    %66 = vector.broadcast %65 : vector<1x128xf32> to vector<2x128xf32>
    %67 = arith.addf %64, %66 : vector<2x128xf32>
    %68 = tpu.iota {dimensions = array<i32: 1>} : vector<2x128xi32>
    %c3_i32 = arith.constant 3 : i32
    %69 = vector.broadcast %c3_i32 : i32 to vector<2x128xi32>
    %70 = arith.cmpi slt, %68, %69 : vector<2x128xi32>
    %cst_39 = arith.constant -1.000000e+30 : f32
    %71 = vector.broadcast %cst_39 : f32 to vector<2x128xf32>
    %72 = arith.select %70, %67, %71 : vector<2x128xi1>, vector<2x128xf32>
    %cst_40 = arith.constant dense<0xFF800000> : vector<2xf32>
    %73 = vector.multi_reduction <maximumf>, %72, %cst_40 [1] : vector<2x128xf32> to vector<2xf32>
    %74 = vector.shape_cast %73 : vector<2xf32> to vector<2x1xf32>
    %75 = vector.broadcast %74 : vector<2x1xf32> to vector<2x128xf32>
    %76 = arith.subf %72, %75 : vector<2x128xf32>
    %77 = math.exp %76 : vector<2x128xf32>
    %cst_41 = arith.constant dense<0.000000e+00> : vector<2xf32>
    %78 = vector.multi_reduction <add>, %77, %cst_41 [1] : vector<2x128xf32> to vector<2xf32>
    %79 = vector.shape_cast %78 : vector<2xf32> to vector<2x1xf32>
    %80 = vector.broadcast %79 : vector<2x1xf32> to vector<2x128xf32>
    %81 = arith.divf %77, %80 : vector<2x128xf32>
    %c0_42 = arith.constant 0 : index
    %c0_43 = arith.constant 0 : index
    %c0_44 = arith.constant 0 : index
    %82 = vector.load %arg12[%c0_42, %c0_43, %c0_44] : memref<3x2x128xf32, #tpu.memory_space<vmem>>, vector<1x2x128xf32>
    %83 = vector.shape_cast %82 : vector<1x2x128xf32> to vector<2x128xf32>
    %84 = vector.shape_cast %81 : vector<2x128xf32> to vector<1x2x128xf32>
    tpu.vector_store %arg12[%c0_42, %c0_43, %c0_44], %84 {strides = array<i32>} : memref<3x2x128xf32, #tpu.memory_space<vmem>>, vector<1x2x128xf32>,
    %c3_i32_45 = arith.constant 3 : i32
    %85 = vector.broadcast %c3_i32_45 : i32 to vector<2x128xi32>
    %86 = arith.cmpi sge, %68, %85 : vector<2x128xi32>
    %c5_i32 = arith.constant 5 : i32
    %87 = vector.broadcast %c5_i32 : i32 to vector<2x128xi32>
    %88 = arith.cmpi slt, %68, %87 : vector<2x128xi32>
    %89 = arith.andi %86, %88 : vector<2x128xi1>
    %cst_46 = arith.constant -1.000000e+30 : f32
    %90 = vector.broadcast %cst_46 : f32 to vector<2x128xf32>
    %91 = arith.select %89, %67, %90 : vector<2x128xi1>, vector<2x128xf32>
    %cst_47 = arith.constant dense<0xFF800000> : vector<2xf32>
    %92 = vector.multi_reduction <maximumf>, %91, %cst_47 [1] : vector<2x128xf32> to vector<2xf32>
    %93 = vector.shape_cast %92 : vector<2xf32> to vector<2x1xf32>
    %94 = vector.broadcast %93 : vector<2x1xf32> to vector<2x128xf32>
    %95 = arith.subf %91, %94 : vector<2x128xf32>
    %96 = math.exp %95 : vector<2x128xf32>
    %cst_48 = arith.constant dense<0.000000e+00> : vector<2xf32>
    %97 = vector.multi_reduction <add>, %96, %cst_48 [1] : vector<2x128xf32> to vector<2xf32>
    %98 = vector.shape_cast %97 : vector<2xf32> to vector<2x1xf32>
    %99 = vector.broadcast %98 : vector<2x1xf32> to vector<2x128xf32>
    %100 = arith.divf %96, %99 : vector<2x128xf32>
    %c1 = arith.constant 1 : index
    %c0_49 = arith.constant 0 : index
    %c0_50 = arith.constant 0 : index
    %101 = vector.load %arg12[%c1, %c0_49, %c0_50] : memref<3x2x128xf32, #tpu.memory_space<vmem>>, vector<1x2x128xf32>
    %102 = vector.shape_cast %101 : vector<1x2x128xf32> to vector<2x128xf32>
    %103 = vector.shape_cast %100 : vector<2x128xf32> to vector<1x2x128xf32>
    tpu.vector_store %arg12[%c1, %c0_49, %c0_50], %103 {strides = array<i32>} : memref<3x2x128xf32, #tpu.memory_space<vmem>>, vector<1x2x128xf32>,
    %cst_51 = arith.constant 0.000000e+00 : f32
    %104 = vector.broadcast %cst_51 : f32 to vector<2x120xf32>
    %105 = tpu.concatenate %46, %104 in 1 : vector<2x8xf32>, vector<2x120xf32> -> vector<2x128xf32>
    %c2 = arith.constant 2 : index
    %c0_52 = arith.constant 0 : index
    %c0_53 = arith.constant 0 : index
    %106 = vector.load %arg12[%c2, %c0_52, %c0_53] : memref<3x2x128xf32, #tpu.memory_space<vmem>>, vector<1x2x128xf32>
    %107 = vector.shape_cast %106 : vector<1x2x128xf32> to vector<2x128xf32>
    %108 = vector.shape_cast %105 : vector<2x128xf32> to vector<1x2x128xf32>
    tpu.vector_store %arg12[%c2, %c0_52, %c0_53], %108 {strides = array<i32>} : memref<3x2x128xf32, #tpu.memory_space<vmem>>, vector<1x2x128xf32>,
    return
  }
  func.func @transform_0(%arg0: i32) -> (i32, i32, i32) {
    %c0_i32 = arith.constant 0 : i32
    %c0_i32_0 = arith.constant 0 : i32
    %c0_i32_1 = arith.constant 0 : i32
    return %arg0, %c0_i32, %c0_i32_0 : i32, i32, i32
  }
  func.func @transform_1(%arg0: i32) -> (i32, i32, i32) {
    %c0_i32 = arith.constant 0 : i32
    %c0_i32_0 = arith.constant 0 : i32
    %c0_i32_1 = arith.constant 0 : i32
    return %arg0, %c0_i32, %c0_i32_0 : i32, i32, i32
  }
  func.func @transform_2(%arg0: i32) -> (i32, i32, i32) {
    %c0_i32 = arith.constant 0 : i32
    %c0_i32_0 = arith.constant 0 : i32
    %c0_i32_1 = arith.constant 0 : i32
    %c0_i32_2 = arith.constant 0 : i32
    return %c0_i32, %c0_i32_0, %c0_i32_1 : i32, i32, i32
  }
  func.func @transform_3(%arg0: i32) -> (i32, i32, i32) {
    %c0_i32 = arith.constant 0 : i32
    %c0_i32_0 = arith.constant 0 : i32
    %c0_i32_1 = arith.constant 0 : i32
    %c0_i32_2 = arith.constant 0 : i32
    return %c0_i32, %c0_i32_0, %c0_i32_1 : i32, i32, i32
  }
  func.func @transform_4(%arg0: i32) -> (i32, i32, i32) {
    %c0_i32 = arith.constant 0 : i32
    %c0_i32_0 = arith.constant 0 : i32
    %c0_i32_1 = arith.constant 0 : i32
    %c0_i32_2 = arith.constant 0 : i32
    return %c0_i32, %c0_i32_0, %c0_i32_1 : i32, i32, i32
  }
  func.func @transform_5(%arg0: i32) -> (i32, i32) {
    %c0_i32 = arith.constant 0 : i32
    %c0_i32_0 = arith.constant 0 : i32
    %c0_i32_1 = arith.constant 0 : i32
    return %c0_i32, %c0_i32_0 : i32, i32
  }
  func.func @transform_6(%arg0: i32) -> (i32, i32) {
    %c0_i32 = arith.constant 0 : i32
    %c0_i32_0 = arith.constant 0 : i32
    %c0_i32_1 = arith.constant 0 : i32
    return %c0_i32, %c0_i32_0 : i32, i32
  }
  func.func @transform_7(%arg0: i32) -> (i32, i32) {
    %c0_i32 = arith.constant 0 : i32
    %c0_i32_0 = arith.constant 0 : i32
    %c0_i32_1 = arith.constant 0 : i32
    return %c0_i32, %c0_i32_0 : i32, i32
  }
  func.func @transform_8(%arg0: i32) -> (i32, i32) {
    %c0_i32 = arith.constant 0 : i32
    %c0_i32_0 = arith.constant 0 : i32
    %c0_i32_1 = arith.constant 0 : i32
    return %c0_i32, %c0_i32_0 : i32, i32
  }
  func.func @transform_9(%arg0: i32) -> (i32, i32) {
    %c0_i32 = arith.constant 0 : i32
    %c0_i32_0 = arith.constant 0 : i32
    %c0_i32_1 = arith.constant 0 : i32
    return %c0_i32, %c0_i32_0 : i32, i32
  }
  func.func @transform_10(%arg0: i32) -> (i32, i32) {
    %c0_i32 = arith.constant 0 : i32
    %c0_i32_0 = arith.constant 0 : i32
    %c0_i32_1 = arith.constant 0 : i32
    return %c0_i32, %c0_i32_0 : i32, i32
  }
  func.func @transform_11(%arg0: i32) -> (i32, i32, i32) {
    %c0_i32 = arith.constant 0 : i32
    %c0_i32_0 = arith.constant 0 : i32
    %c0_i32_1 = arith.constant 0 : i32
    return %c0_i32, %arg0, %c0_i32_0 : i32, i32, i32
  }
}

</mosaic_0001>

<bundles_post_ra>
// kernel: forward.1
= control target key start
LH: loop header
LB: loop body
LE: loop exit
PB: predicated region body
PF: predicated region fallthrough
CT: control target
= control target key end

     0   :  { %16 = vsyncpa [#allocation3], 0  ;;  %s3623_s20 = smov [#allocation2]   ;;  %s3624_s22 = smov 256   ;;  %s4201_s0 = inlined_call_operand.vmem [shape: bf16[2,8,768], index: 0, kind: input, shape index: {}]   ;;  %s4202_s1 = inlined_call_operand.vmem [shape: f32[2,8,1], index: 1, kind: input, shape index: {}]   ;;  %s4203_s2 = inlined_call_operand.vmem [shape: f32[1,1,768], index: 2, kind: input, shape index: {}]   ;;  %s4204_s3 = inlined_call_operand.vmem [shape: f32[1,1,768], index: 3, kind: input, shape index: {}]   ;;  %s4205_s4 = inlined_call_operand.vmem [shape: f32[1,1,768], index: 4, kind: input, shape index: {}]   ;;  %s4206_s5 = inlined_call_operand.hbm [shape: bf16[768,512], index: 5, kind: input, shape index: {}]   ;;  %s4207_s6 = inlined_call_operand.vmem [shape: f32[1,512], index: 6, kind: input, shape index: {}]   ;;  %s4208_s7 = inlined_call_operand.vmem [shape: bf16[512,128], index: 7, kind: input, shape index: {}]   ;;  %s4209_s8 = inlined_call_operand.vmem [shape: f32[1,128], index: 8, kind: input, shape index: {}]   ;;  %s4210_s9 = inlined_call_operand.vmem [shape: bf16[128,128], index: 9, kind: input, shape index: {}]   ;;  %s4211_s10 = inlined_call_operand.vmem [shape: f32[1,128], index: 10, kind: input, shape index: {}]   ;;  %s4212_s11 = inlined_call_operand.vmem [shape: f32[3,2,128], index: 11, kind: output, shape index: {}]  }
   0x1   :  { %s31_s19 = sshll.u32 %s4206_s5, 4  ;;  %s33_s21 = sshll.u32 %s3623_s20, 4  ;;  %s32_s19 = int_to_ptr.hbm [resolvable:$true] %s31_s19  ;;  %s34_s21 = int_to_ptr.vmem [resolvable:$true] %s33_s21 }
   0x2   :  { %s3625_s23 = smov 16  }
   0x3   :  { %39 = dma.hbm_to_vmem [thread:$0]  %s32_s19, 24576, %s34_s21, [#allocation3], %s3624_s22, %s3624_s22, %s3625_s23  }
   0x4   :  { %3621 = dma.done.wait [#allocation3], 24576  }
   0x5   :  { %3622 = vsyncadd [#allocation3], 4294942720  ;;  %v54_v0 = vld [vmem:[%s4201_s0] sm:$0xff]  ;;  %v55_v1 = vld [vmem:[%s4201_s0 + $0x8] sm:$0xff]  ;;  %v3626_v50 = vmov 768.0   ;;  %vm271_vm8 = vcmask 7168  }
   0x6   :  { %v56_v2 = vld [vmem:[%s4201_s0 + $0x10] sm:$0xff]  ;;  %v3700_v3 = vunpack.c.l.bf16 %v54_v0  ;;  %v3702_v4 = vunpack.c.h.bf16 %v54_v0  ;;  %v3704_v5 = vunpack.c.l.bf16 %v55_v1  ;;  %v3706_v6 = vunpack.c.h.bf16 %v55_v1  ;;  %v57_v7 = vld [vmem:[%s4201_s0 + $0x18] sm:$0xff]  ;;  %v58_v8 = vld [vmem:[%s4201_s0 + $0x20] sm:$0xff] }
   0x7   :  { %v3714_v9 = vunpack.c.l.bf16 %v56_v2  ;;  %v3716_v10 = vunpack.c.l.bf16 %v57_v7  ;;  %v3718_v11 = vunpack.c.h.bf16 %v57_v7  ;;  %v3728_v16 = vunpack.c.h.bf16 %v56_v2  ;;  %v59_v17 = vld [vmem:[%s4201_s0 + $0x28] sm:$0xff] }
   0x8   :  { %v72_v12 = vadd.f32 %v3702_v4, %v3700_v3  ;;  %v95_v13 = vmul.f32 %v3700_v3, %v3700_v3  ;;  %v96_v14 = vmul.f32 %v3702_v4, %v3702_v4  ;;  %v97_v15 = vmul.f32 %v3704_v5, %v3704_v5 }
   0x9   :  { %v3733_v18 = vunpack.c.l.bf16 %v58_v8  ;;  %v98_v20 = vmul.f32 %v3706_v6, %v3706_v6  ;;  %v3738_v22 = vunpack.c.h.bf16 %v58_v8  ;;  %v99_v23 = vmul.f32 %v3714_v9, %v3714_v9 }
   0xa   :  { %v73_v19 = vadd.f32 %v72_v12, %v3704_v5  ;;  %v107_v21 = vadd.f32 %v96_v14, %v95_v13  ;;  %v79_v24 = vadd.f32 %v3718_v11, %v3716_v10  ;;  %v101_v25 = vmul.f32 %v3716_v10, %v3716_v10 }
   0xb   :  { %v102_v26 = vmul.f32 %v3718_v11, %v3718_v11  ;;  %v3749_v29 = vunpack.c.l.bf16 %v59_v17  ;;  %v103_v30 = vmul.f32 %v3733_v18, %v3733_v18  ;;  %v104_v32 = vmul.f32 %v3738_v22, %v3738_v22 }
   0xc   :  { %v74_v27 = vadd.f32 %v73_v19, %v3706_v6  ;;  %v108_v28 = vadd.f32 %v107_v21, %v97_v15  ;;  %v80_v31 = vadd.f32 %v79_v24, %v3733_v18  ;;  %v100_v35 = vmul.f32 %v3728_v16, %v3728_v16  ;;  %v3782_v15 = vld [vmem:[%s4203_s2] sm:$0x3f] }
   0xd   :  { %v114_v33 = vadd.f32 %v102_v26, %v101_v25  ;;  %v3761_v41 = vunpack.c.h.bf16 %v59_v17  ;;  %v105_v42 = vmul.f32 %v3749_v29, %v3749_v29  ;;  %3575 = vrcp.f32 %v3626_v50  ;;  %v3788_v19 = vld [vmem:[%s4204_s3] sm:$0x3f] }
   0xe   :  { %v75_v34 = vadd.f32 %v74_v27, %v3714_v9  ;;  %v109_v36 = vadd.f32 %v108_v28, %v98_v20  ;;  %v81_v37 = vadd.f32 %v80_v31, %v3738_v22  ;;  %v175_v21 = vperm.slane %v3782_v15, 0  ;;  %v3798_v27 = vld [vmem:[%s4205_s4] sm:$0x3f] }
   0xf   :  { %v115_v38 = vadd.f32 %v114_v33, %v103_v30  ;;  %v106_v46 = vmul.f32 %v3761_v41, %v3761_v41  ;;  %v177_v24 = vperm.slane %v3782_v15, 2  ;;  %v178_v25 = vperm.slane %v3782_v15, 3 }
  0x10   :  { %v76_v39 = vadd.f32 %v75_v34, %v3728_v16  ;;  %v110_v40 = vadd.f32 %v109_v36, %v99_v23  ;;  %v82_v45 = vadd.f32 %v81_v37, %v3749_v29  ;;  %v176_v23 = vperm.slane %v3782_v15, 1 }
  0x11   :  { %v116_v43 = vadd.f32 %v115_v38, %v104_v32  ;;  %v179_v26 = vperm.slane %v3782_v15, 4  ;;  %v180_v30 = vperm.slane %v3782_v15, 5  ;;  %v201_v31 = vperm.slane %v3788_v19, 0 }
  0x12   :  { %77 = vadd.xlane.f32.xlu0 %v76_v39  ;;  %v111_v44 = vadd.f32 %v110_v40, %v100_v35  ;;  %v83_v48 = vadd.f32 %v82_v45, %v3761_v41  ;;  %v202_v32 = vperm.slane %v3788_v19, 1  ;;  %v203_v33 = vperm.slane %v3788_v19, 2 }
  0x13   :  { %v117_v47 = vadd.f32 %v116_v43, %v105_v42  ;;  %v3576_v51 = vpop.eup %3575  ;;  %v204_v34 = vperm.slane %v3788_v19, 3  ;;  %v205_v35 = vperm.slane %v3788_v19, 4  ;;  %v206_v36 = vperm.slane %v3788_v19, 5  ;;  %v265_v19 = vld [vmem:[%s4202_s1] sm:$0xff] }
  0x14   :  { %112 = vadd.xlane.f32.xlu1 %v111_v44  ;;  %v87_v52 = vmul.f32 768.0, %v3576_v51  ;;  %vm91_vm0 = vweird.f32 %v3576_v51  ;;  %v227_v38 = vperm.slane %v3798_v27, 0  ;;  %v228_v39 = vperm.slane %v3798_v27, 1 }
  0x15   :  { %v118_v49 = vadd.f32 %v117_v47, %v106_v46  ;;  %v229_v42 = vperm.slane %v3798_v27, 2  ;;  %v230_v43 = vperm.slane %v3798_v27, 3  ;;  %v231_v44 = vperm.slane %v3798_v27, 4 }
  0x16   :  { %v88_v53 = vsub.f32 1.0, %v87_v52  ;;  %v232_v45 = vperm.slane %v3798_v27, 5  ;;  %vm267_vm7 = vcmp.eq.f32.partialorder %v265_v19, 0.0  ;;  %v2486_v19 = vld [vmem:[#allocation2 + $0xa0] sm:$0xf]  ;;  %vm642_vm10 = vcmask 1041409  }
  0x17   :  { %vm2395_vm11 = vcmask 64512   ;;  %vm2335_vm13 = vcmask 1041408  }
  0x18   :  { %v89_v54 = vmul.f32 %v3576_v51, %v88_v53 }
  0x1a   :  { %84 = vadd.xlane.f32.xlu0 %v83_v48  ;;  %v90_v55 = vadd.f32 %v3576_v51, %v89_v54 }
  0x1c   :  { %119 = vadd.xlane.f32.xlu1 %v118_v49  ;;  %v92_v56 = vsel %vm91_vm0, %v3576_v51, %v90_v55 }
  0x85   :  { %v78_v57 = vpop.xlane.xlu0 %77 }
  0x86   :  { %v3769_v58 = vmul.f32 %v92_v56, %v78_v57 }
  0x87   :  { %v113_v59 = vpop.xlane.xlu1 %112 }
  0x88   :  { %v121_v60 = vmul.f32 %v113_v59, %v92_v56  ;;  %v123_v61 = vmul.f32 %v3769_v58, %v3769_v58  ;;  %v127_v48 = vsub.f32 %v3700_v3, %v3769_v58  ;;  %v128_v49 = vsub.f32 %v3702_v4, %v3769_v58 }
  0x89   :  { %v129_v50 = vsub.f32 %v3704_v5, %v3769_v58  ;;  %v130_v51 = vsub.f32 %v3706_v6, %v3769_v58  ;;  %v131_v52 = vsub.f32 %v3714_v9, %v3769_v58  ;;  %v132_v55 = vsub.f32 %v3728_v16, %v3769_v58 }
  0x8a   :  { %v125_v62 = vsub.f32 %v121_v60, %v123_v61 }
  0x8c   :  { %v139_v63 = vadd.f32 1e-12, %v125_v62 }
  0x8d   :  { %v85_v0 = vpop.xlane.xlu0 %84 }
  0x8e   :  { %3577 = vrsqrt.f32 %v139_v63  ;;  %v3773_v1 = vmul.f32 %v92_v56, %v85_v0  ;;  %vm147_vm2 = vweird.f32 %v139_v63 }
  0x8f   :  { %v120_v2 = vpop.xlane.xlu1 %119 }
  0x90   :  { %v122_v7 = vmul.f32 %v120_v2, %v92_v56  ;;  %v124_v8 = vmul.f32 %v3773_v1, %v3773_v1  ;;  %v133_v3 = vsub.f32 %v3716_v10, %v3773_v1  ;;  %v134_v6 = vsub.f32 %v3718_v11, %v3773_v1 }
  0x92   :  { %v126_v12 = vsub.f32 %v122_v7, %v124_v8  ;;  %v135_v8 = vsub.f32 %v3733_v18, %v3773_v1  ;;  %v137_v18 = vsub.f32 %v3749_v29, %v3773_v1 }
  0x94   :  { %v3578_v13 = vpop.eup %3577  ;;  %v3777_v14 = vadd.f32 1e-12, %v126_v12 }
  0x95   :  { %v142_v17 = vmul.f32 %v3578_v13, %v139_v63  ;;  %vm148_vm1 = vweird.f32 %v3578_v13 }
  0x96   :  { %3579 = vrsqrt.f32 %v3777_v14  ;;  %vm149_vm3 = vmor %vm147_vm2, %vm148_vm1  ;;  %vm157_vm5 = vweird.f32 %v3777_v14 }
  0x97   :  { %v143_v20 = vmul.f32 %v3578_v13, %v142_v17  ;;  %v136_v17 = vsub.f32 %v3738_v22, %v3773_v1 }
  0x99   :  { %v144_v28 = vmul.f32 0.5, %v143_v20 }
  0x9b   :  { %v145_v37 = vsub.f32 1.5, %v144_v28 }
  0x9c   :  { %v3580_v40 = vpop.eup %3579 }
  0x9d   :  { %v146_v46 = vmul.f32 %v3578_v13, %v145_v37  ;;  %v152_v47 = vmul.f32 %v3580_v40, %v3777_v14  ;;  %vm158_vm4 = vweird.f32 %v3580_v40  ;;  %v138_v14 = vsub.f32 %v3761_v41, %v3773_v1 }
  0x9e   :  { %vm159_vm6 = vmor %vm157_vm5, %vm158_vm4 }
  0x9f   :  { %v150_v53 = vsel %vm149_vm3, %v3578_v13, %v146_v46  ;;  %v153_v54 = vmul.f32 %v3580_v40, %v152_v47 }
  0xa0   :  { %v161_v56 = vmul.f32 %v150_v53, %v127_v48  ;;  %v162_v57 = vmul.f32 %v150_v53, %v128_v49  ;;  %v163_v4 = vmul.f32 %v150_v53, %v129_v50  ;;  %v164_v59 = vmul.f32 %v150_v53, %v130_v51 }
  0xa1   :  { %v154_v60 = vmul.f32 0.5, %v153_v54  ;;  %v165_v5 = vmul.f32 %v150_v53, %v131_v52  ;;  %v166_v61 = vmul.f32 %v150_v53, %v132_v55 }
  0xa2   :  { %v187_v9 = vmul.f32 %v175_v21, %v161_v56  ;;  %v188_v62 = vmul.f32 %v176_v23, %v162_v57  ;;  %v189_v16 = vmul.f32 %v177_v24, %v163_v4  ;;  %v190_v10 = vmul.f32 %v178_v25, %v164_v59 }
  0xa3   :  { %v155_v58 = vsub.f32 1.5, %v154_v60  ;;  %v191_v63 = vmul.f32 %v179_v26, %v165_v5  ;;  %v192_v11 = vmul.f32 %v180_v30, %v166_v61 }
  0xa4   :  { %v3844_v0 = vadd.f32 %v201_v31, %v187_v9  ;;  %v3848_v2 = vadd.f32 %v202_v32, %v188_v62  ;;  %v3852_v7 = vadd.f32 %v203_v33, %v189_v16  ;;  %v3859_v13 = vadd.f32 %v204_v34, %v190_v10 }
  0xa5   :  { %v156_v12 = vmul.f32 %v3580_v40, %v155_v58  ;;  %v3875_v46 = vadd.f32 %v205_v35, %v191_v63  ;;  %v3879_v22 = vadd.f32 %v206_v36, %v192_v11 }
  0xa6   :  { %v239_v20 = vmul.f32 %v227_v38, %v3844_v0  ;;  %v240_v28 = vmul.f32 %v228_v39, %v3848_v2  ;;  %v241_v47 = vmul.f32 %v229_v42, %v3852_v7  ;;  %v242_v41 = vmul.f32 %v230_v43, %v3859_v13 }
  0xa7   :  { %v160_v37 = vsel %vm159_vm6, %v3580_v40, %v156_v12 }
  0xa8   :  { %v251_v48 = vadd.f32 %v240_v28, %v239_v20  ;;  %v167_v49 = vmul.f32 %v160_v37, %v133_v3  ;;  %v168_v50 = vmul.f32 %v160_v37, %v134_v6  ;;  %v169_v29 = vmul.f32 %v160_v37, %v135_v8 }
  0xa9   :  { %v170_v1 = vmul.f32 %v160_v37, %v136_v17  ;;  %v171_v40 = vmul.f32 %v160_v37, %v137_v18  ;;  %v172_v51 = vmul.f32 %v160_v37, %v138_v14  ;;  %v243_v3 = vmul.f32 %v231_v44, %v3875_v46 }
  0xaa   :  { %v252_v52 = vadd.f32 %v251_v48, %v241_v47  ;;  %v193_v53 = vmul.f32 %v175_v21, %v167_v49  ;;  %v194_v54 = vmul.f32 %v176_v23, %v168_v50  ;;  %v195_v55 = vmul.f32 %v177_v24, %v169_v29  ;;  %v2518_v29 = vld [vmem:[#allocation2 + $0xe0] sm:$0xf] }
  0xab   :  { %v196_v56 = vmul.f32 %v178_v25, %v170_v1  ;;  %v197_v57 = vmul.f32 %v179_v26, %v171_v40  ;;  %v244_v25 = vmul.f32 %v232_v45, %v3879_v22  ;;  %v198_v26 = vmul.f32 %v180_v30, %v172_v51  ;;  %v2646_v1 = vld [vmem:[#allocation2 + $0x1e0] sm:$0xf] }
  0xac   :  { %v253_v4 = vadd.f32 %v252_v52, %v242_v41  ;;  %v3902_v21 = vadd.f32 %v201_v31, %v193_v53  ;;  %v3906_v23 = vadd.f32 %v202_v32, %v194_v54  ;;  %v3910_v24 = vadd.f32 %v203_v33, %v195_v55  ;;  %v3364_v41 = vld [vmem:[#allocation2 + $0xec] sm:$0xf0]  ;;  %v2774_v54 = vld [vmem:[#allocation2 + $0x2e0] sm:$0xf] }
  0xad   :  { %v3919_v31 = vadd.f32 %v204_v34, %v196_v56  ;;  %v3929_v5 = vadd.f32 %v205_v35, %v197_v57  ;;  %v3936_v34 = vadd.f32 %v206_v36, %v198_v26  ;;  %v3627_v8 = vmov 0   ;;  %v3396_v53 = vld [vmem:[#allocation2 + $0x1ec] sm:$0xf0]  ;;  %v2902_v57 = vld [vmem:[#allocation2 + $0x3e0] sm:$0xf] }
  0xae   :  { %v254_v59 = vadd.f32 %v253_v4, %v243_v3  ;;  %v245_v32 = vmul.f32 %v227_v38, %v3902_v21  ;;  %v246_v33 = vmul.f32 %v228_v39, %v3906_v23  ;;  %v247_v15 = vmul.f32 %v229_v42, %v3910_v24  ;;  %3571 = vset.pattern.permute.xlu0 %v3627_v8  ;;  %v3428_v56 = vld [vmem:[#allocation2 + $0x2ec] sm:$0xf0] }
  0xaf   :  { %v248_v38 = vmul.f32 %v230_v43, %v3919_v31  ;;  %v249_v35 = vmul.f32 %v231_v44, %v3929_v5  ;;  %v250_v42 = vmul.f32 %v232_v45, %v3936_v34  ;;  %v266_v44 = vld [vmem:[%s4202_s1 + $0x8] sm:$0xff]  ;;  %3572 = vset.pattern.permute.xlu1 %v3627_v8  ;;  %v2519_v52 = vor.u32 %v3364_v41, %v2518_v29  ;;  %v3460_v26 = vld [vmem:[#allocation2 + $0x3ec] sm:$0xf0]  ;;  %v2726_v29 = vld [vmem:[#allocation2 + $0x280] sm:$0xf] }
  0xb0   :  { %v255_v60 = vadd.f32 %v254_v59, %v244_v25  ;;  %v258_v30 = vadd.f32 %v246_v33, %v245_v32  ;;  %vm268_vm9 = vcmp.eq.f32.partialorder %v266_v44, 0.0  ;;  %v2647_v3 = vor.u32 %v3396_v53, %v2646_v1  ;;  %v2502_v59 = vld [vmem:[#allocation2 + $0xc0] sm:$0xf]  ;;  %v3360_v33 = vld [vmem:[#allocation2 + $0xcc] sm:$0xf0] }
  0xb1   :  { %1621 = vmatpush.bf16.msra.mxu0 %v2519_v52  ;;  %v2775_v25 = vor.u32 %v3428_v56, %v2774_v54  ;;  %v2903_v32 = vor.u32 %v3460_v26, %v2902_v57  ;;  %v2614_v44 = vld [vmem:[#allocation2 + $0x1a0] sm:$0xf]  ;;  %v3416_v41 = vld [vmem:[#allocation2 + $0x28c] sm:$0xf0] }
  0xb2   :  { %256 = vadd.xlane.f32.xlu2 %v255_v60  ;;  %v259_v39 = vadd.f32 %v258_v30, %v247_v15  ;;  %1634 = vmatpush.bf16.msra.mxu1 %v2647_v3  ;;  %v2630_v60 = vld [vmem:[#allocation2 + $0x1c0] sm:$0xf]  ;;  %v3392_v15 = vld [vmem:[#allocation2 + $0x1cc] sm:$0xf0]  ;;  %v2727_v3 = vor.u32 %v3416_v41, %v2726_v29 }
  0xb3   :  { %1647 = vmatpush.bf16.msra.mxu2 %v2775_v25  ;;  %1660 = vmatpush.bf16.msra.mxu3 %v2903_v32  ;;  %v3448_v52 = vld [vmem:[#allocation2 + $0x38c] sm:$0xf0]  ;;  %v2454_v53 = vld [vmem:[#allocation2 + $0x60] sm:$0xf] }
  0xb4   :  { %v260_v61 = vadd.f32 %v259_v39, %v248_v38  ;;  %v2503_v38 = vor.u32 %v3360_v33, %v2502_v59  ;;  %v2631_v39 = vor.u32 %v3392_v15, %v2630_v60  ;;  %v3348_v56 = vld [vmem:[#allocation2 + $0x6c] sm:$0xf0]  ;;  %v2582_v57 = vld [vmem:[#allocation2 + $0x160] sm:$0xf] }
  0xb5   :  { %v2710_v26 = vld [vmem:[#allocation2 + $0x260] sm:$0xf]  ;;  %v3412_v59 = vld [vmem:[#allocation2 + $0x26c] sm:$0xf0]  ;;  %v2455_v33 = vor.u32 %v3348_v56, %v2454_v53 }
  0xb6   :  { %v261_v6 = vadd.f32 %v260_v61, %v249_v35  ;;  %v2758_v35 = vld [vmem:[#allocation2 + $0x2c0] sm:$0xf]  ;;  %v3424_v61 = vld [vmem:[#allocation2 + $0x2cc] sm:$0xf0]  ;;  %1622 = vmatpush.bf16.msra.mxu0 %v2503_v38  ;;  %1635 = vmatpush.bf16.msra.mxu1 %v2631_v39 }
  0xb7   :  { %v2838_v60 = vld [vmem:[#allocation2 + $0x360] sm:$0xf]  ;;  %v3444_v15 = vld [vmem:[#allocation2 + $0x36c] sm:$0xf0] }
  0xb8   :  { %v262_v9 = vadd.f32 %v261_v6, %v250_v42  ;;  %v2886_v42 = vld [vmem:[#allocation2 + $0x3c0] sm:$0xf]  ;;  %v2759_v6 = vor.u32 %v3424_v61, %v2758_v35  ;;  %v3344_v39 = vld [vmem:[#allocation2 + $0x4c] sm:$0xf0]  ;;  %v2711_v61 = vor.u32 %v3412_v59, %v2710_v26 }
  0xb9   :  { %v2438_v38 = vld [vmem:[#allocation2 + $0x40] sm:$0xf]  ;;  %v3336_v29 = vld [vmem:[#allocation2 + $0xc] sm:$0xf0] }
  0xba   :  { %263 = vadd.xlane.f32.xlu2 %v262_v9  ;;  %v3456_v9 = vld [vmem:[#allocation2 + $0x3cc] sm:$0xf0]  ;;  %1648 = vmatpush.bf16.msra.mxu2 %v2759_v6  ;;  %v3030_v59 = vld [vmem:[#allocation2 + $0x4e0] sm:$0xf] }
  0xbb   :  { %v3376_v6 = vld [vmem:[#allocation2 + $0x14c] sm:$0xf0] }
  0xbc   :  { %v3400_v53 = vld [vmem:[#allocation2 + $0x20c] sm:$0xf0] }
 0x125   :  { %v257_v36 = vpop.xlane.xlu2 %256 }
 0x126   :  { %v269_v43 = vsel %vm267_vm7, -1e+09, %v257_v36  ;;  %v3356_v36 = vld [vmem:[#allocation2 + $0xac] sm:$0xf0] }
 0x127   :  { %v272_v62 = vsel %vm271_vm8, %v269_v43, -inf }
 0x128   :  { %v273_v16 = vrot.slane %v272_v62, 4 }
 0x12a   :  { %v274_v27 = vmax.f32 %v272_v62, %v273_v16  ;;  %v2887_v62 = vor.u32 %v3456_v9, %v2886_v42  ;;  %v2487_v16 = vor.u32 %v3356_v36, %v2486_v19  ;;  %v2566_v42 = vld [vmem:[#allocation2 + $0x140] sm:$0xf]  ;;  %v2839_v9 = vor.u32 %v3444_v15, %v2838_v60  ;;  %v3408_v36 = vld [vmem:[#allocation2 + $0x24c] sm:$0xf0] }
 0x12b   :  { %v2694_v19 = vld [vmem:[#allocation2 + $0x240] sm:$0xf]  ;;  %v3524_v15 = vld [vmem:[#allocation2 + $0x5ec] sm:$0xf0] }
 0x12c   :  { %v275_v45 = vrot.slane %v274_v27, 2  ;;  %1661 = vmatpush.bf16.msra.mxu3 %v2887_v62  ;;  %1623 = vmatpush.bf16.msra.mxu0 %v2487_v16  ;;  %v2439_v62 = vor.u32 %v3344_v39, %v2438_v38  ;;  %v2822_v16 = vld [vmem:[#allocation2 + $0x340] sm:$0xf]  ;;  %v2520_v38 = vld [vmem:[#allocation2 + $0xf0] sm:$0xf0] }
 0x12d   :  { %v264_v10 = vpop.xlane.xlu2 %263 }
 0x12e   :  { %v276_v58 = vmax.f32 %v274_v27, %v275_v45  ;;  %v270_v63 = vsel %vm268_vm9, -1e+09, %v264_v10  ;;  %v3388_v27 = vld [vmem:[#allocation2 + $0x1ac] sm:$0xf0]  ;;  %v2742_v10 = vld [vmem:[#allocation2 + $0x2a0] sm:$0xf] }
 0x12f   :  { %v279_v11 = vsel %vm271_vm8, %v270_v63, -inf  ;;  %v2615_v45 = vor.u32 %v3388_v27, %v2614_v44  ;;  %v3440_v44 = vld [vmem:[#allocation2 + $0x34c] sm:$0xf0]  ;;  %v2567_v27 = vor.u32 %v3376_v6, %v2566_v42  ;;  %v2648_v42 = vld [vmem:[#allocation2 + $0x1f0] sm:$0xf0] }
 0x130   :  { %v277_v12 = vrot.slane %v276_v58, 1  ;;  %v280_v17 = vrot.slane %v279_v11, 4  ;;  %v3014_v6 = vld [vmem:[#allocation2 + $0x4c0] sm:$0xf] }
 0x131   :  { %1636 = vmatpush.bf16.msra.mxu1 %v2615_v45  ;;  %v2422_v45 = vld [vmem:[#allocation2 + $0x20] sm:$0xf] }
 0x132   :  { %v278_v20 = vmax.f32 %v276_v58, %v277_v12  ;;  %v281_v28 = vmax.f32 %v279_v11, %v280_v17  ;;  %v3420_v58 = vld [vmem:[#allocation2 + $0x2ac] sm:$0xf0] }
 0x133   :  { %v2743_v12 = vor.u32 %v3420_v58, %v2742_v10  ;;  %v3452_v17 = vld [vmem:[#allocation2 + $0x3ac] sm:$0xf0] }
 0x134   :  { %v286_v18 = vsub.f32 %v269_v43, %v278_v20  ;;  %v282_v14 = vrot.slane %v281_v28, 2  ;;  %v2470_v20 = vld [vmem:[#allocation2 + $0x80] sm:$0xf]  ;;  %v3340_v10 = vld [vmem:[#allocation2 + $0x2c] sm:$0xf0] }
 0x135   :  { %1649 = vmatpush.bf16.msra.mxu2 %v2743_v12  ;;  %v2550_v12 = vld [vmem:[#allocation2 + $0x120] sm:$0xf] }
 0x136   :  { %v288_v37 = vmul.f32 1.442695, %v286_v18  ;;  %v283_v47 = vmax.f32 %v281_v28, %v282_v14  ;;  %v3352_v28 = vld [vmem:[#allocation2 + $0x8c] sm:$0xf0] }
 0x138   :  { %3581 = vpow2.f32 %v288_v37  ;;  %v284_v48 = vrot.slane %v283_v47, 1  ;;  %v2598_v37 = vld [vmem:[#allocation2 + $0x180] sm:$0xf] }
 0x139   :  { %1650 = vmatpush.bf16.msra.mxu2 %v2727_v3  ;;  %v3432_v3 = vld [vmem:[#allocation2 + $0x30c] sm:$0xf0] }
 0x13a   :  { %v285_v49 = vmax.f32 %v283_v47, %v284_v48  ;;  %v3384_v47 = vld [vmem:[#allocation2 + $0x18c] sm:$0xf0] }
 0x13b   :  { %v2599_v1 = vor.u32 %v3384_v47, %v2598_v37  ;;  %v2423_v37 = vor.u32 %v3340_v10, %v2422_v45  ;;  %v2806_v47 = vld [vmem:[#allocation2 + $0x320] sm:$0xf]  ;;  %v3390_v45 = vld [vmem:[#allocation2 + $0x1c4] sm:$0xf]  ;;  %v2632_v10 = vld [vmem:[#allocation2 + $0x1d0] sm:$0xf0] }
 0x13c   :  { %v287_v50 = vsub.f32 %v270_v63, %v285_v49  ;;  %v2870_v63 = vld [vmem:[#allocation2 + $0x3a0] sm:$0xf] }
 0x13d   :  { %v2871_v14 = vor.u32 %v3452_v17, %v2870_v63  ;;  %1637 = vmatpush.bf16.msra.mxu1 %v2599_v1  ;;  %1651 = vmatpush.bf16.msra.mxu2 %v2711_v61  ;;  %v3372_v17 = vld [vmem:[#allocation2 + $0x12c] sm:$0xf0]  ;;  %v2534_v1 = vld [vmem:[#allocation2 + $0x100] sm:$0xf]  ;;  %v3394_v61 = vld [vmem:[#allocation2 + $0x1e4] sm:$0xf] }
 0x13e   :  { %v3955_v40 = vpop.eup %3581  ;;  %v290_v51 = vmul.f32 1.442695, %v287_v50  ;;  %v2471_v50 = vor.u32 %v3352_v28, %v2470_v20  ;;  %v2823_v28 = vor.u32 %v3440_v44, %v2822_v16  ;;  %v2504_v16 = vld [vmem:[#allocation2 + $0xd0] sm:$0xf0] }
 0x13f   :  { %v292_v55 = vsel %vm271_vm8, %v3955_v40, 0.0  ;;  %1662 = vmatpush.bf16.msra.mxu3 %v2871_v14  ;;  %v3404_v14 = vld [vmem:[#allocation2 + $0x22c] sm:$0xf0] }
 0x140   :  { %v293_v4 = vrot.slane %v292_v55, 4  ;;  %3583 = vpow2.f32 %v290_v51  ;;  %v2854_v51 = vld [vmem:[#allocation2 + $0x380] sm:$0xf]  ;;  %1624 = vmatpush.bf16.msra.mxu0 %v2471_v50 }
 0x141   :  { %v2855_v25 = vor.u32 %v3448_v52, %v2854_v51  ;;  %v2406_v50 = vld [vmem:[#allocation2] sm:$0xf]  ;;  %v3368_v51 = vld [vmem:[#allocation2 + $0x10c] sm:$0xf0] }
 0x142   :  { %v294_v30 = vadd.f32 %v293_v4, %v292_v55  ;;  %v3380_v4 = vld [vmem:[#allocation2 + $0x16c] sm:$0xf0]  ;;  %v2662_v52 = vld [vmem:[#allocation2 + $0x200] sm:$0xf]  ;;  %v2535_v56 = vor.u32 %v3368_v51, %v2534_v1 }
 0x143   :  { %1663 = vmatpush.bf16.msra.mxu3 %v2855_v25  ;;  %v3512_v51 = vld [vmem:[#allocation2 + $0x58c] sm:$0xf0] }
 0x144   :  { %v295_v43 = vrot.slane %v294_v30, 2  ;;  %1625 = vmatpush.bf16.msra.mxu0 %v2455_v33  ;;  %v3158_v33 = vld [vmem:[#allocation2 + $0x5e0] sm:$0xf] }
 0x145   :  { %v3159_v39 = vor.u32 %v3524_v15, %v3158_v33  ;;  %v2456_v33 = vld [vmem:[#allocation2 + $0x70] sm:$0xf0] }
 0x146   :  { %v3959_v11 = vpop.eup %3583  ;;  %v296_v8 = vadd.f32 %v295_v43, %v294_v30  ;;  %v2583_v30 = vor.u32 %v3380_v4, %v2582_v57  ;;  %v2663_v4 = vor.u32 %v3400_v53, %v2662_v52  ;;  %v2472_v52 = vld [vmem:[#allocation2 + $0x90] sm:$0xf0] }
 0x147   :  { %v299_v18 = vsel %vm271_vm8, %v3959_v11, 0.0  ;;  %1664 = vmatpush.bf16.msra.mxu3 %v2839_v9  ;;  %v3488_v9 = vld [vmem:[#allocation2 + $0x4cc] sm:$0xf0] }
 0x148   :  { %v300_v48 = vrot.slane %v299_v18, 4  ;;  %v297_v49 = vrot.slane %v296_v8, 1  ;;  %1638 = vmatpush.bf16.msra.mxu1 %v2583_v30  ;;  %1626 = vmatpush.bf16.msra.mxu0 %v2439_v62  ;;  %v3362_v30 = vld [vmem:[#allocation2 + $0xe4] sm:$0xf] }
 0x149   :  { %v3358_v62 = vld [vmem:[#allocation2 + $0xc4] sm:$0xf] }
 0x14a   :  { %v301_v54 = vadd.f32 %v300_v48, %v299_v18  ;;  %v298_v55 = vadd.f32 %v297_v49, %v296_v8  ;;  %v2695_v8 = vor.u32 %v3408_v36, %v2694_v19  ;;  %v2678_v18 = vld [vmem:[#allocation2 + $0x220] sm:$0xf]  ;;  %v3436_v48 = vld [vmem:[#allocation2 + $0x32c] sm:$0xf0]  ;;  %v2551_v49 = vor.u32 %v3372_v17, %v2550_v12 }
 0x14b   :  { %v2679_v41 = vor.u32 %v3404_v14, %v2678_v18  ;;  %1665 = vmatpush.bf16.msra.mxu3 %v2823_v28  ;;  %v3142_v19 = vld [vmem:[#allocation2 + $0x5c0] sm:$0xf]  ;;  %v3015_v36 = vor.u32 %v3488_v9, %v3014_v6  ;;  %v3354_v28 = vld [vmem:[#allocation2 + $0xa4] sm:$0xf]  ;;  %v2488_v14 = vld [vmem:[#allocation2 + $0xb0] sm:$0xf0] }
 0x14c   :  { %v302_v32 = vrot.slane %v301_v54, 2  ;;  %3585 = vrcp.f32 %v298_v55  ;;  %1639 = vmatpush.bf16.msra.mxu1 %v2567_v27  ;;  %1652 = vmatpush.bf16.msra.mxu2 %v2695_v8  ;;  %v2790_v55 = vld [vmem:[#allocation2 + $0x300] sm:$0xf]  ;;  %v2507_v27 = vor.u32 %v3358_v62, %v2504_v16  ;;  %v3484_v8 = vld [vmem:[#allocation2 + $0x4ac] sm:$0xf0] }
 0x14d   :  { %1627 = vmatpush.bf16.msra.mxu0 %v2423_v37  ;;  %v2791_v26 = vor.u32 %v3432_v3, %v2790_v55  ;;  %v3126_v17 = vld [vmem:[#allocation2 + $0x5a0] sm:$0xf]  ;;  %v3386_v37 = vld [vmem:[#allocation2 + $0x1a4] sm:$0xf]  ;;  %v2600_v3 = vld [vmem:[#allocation2 + $0x190] sm:$0xf0] }
 0x14e   :  { %v303_v35 = vadd.f32 %v302_v32, %v301_v54  ;;  %v2407_v54 = vor.u32 %v3336_v29, %v2406_v50  ;;  %v3492_v32 = vld [vmem:[#allocation2 + $0x4ec] sm:$0xf0]  ;;  %v2982_v50 = vld [vmem:[#allocation2 + $0x480] sm:$0xf]  ;;  %v3382_v55 = vld [vmem:[#allocation2 + $0x184] sm:$0xf] }
 0x14f   :  { %v3031_v60 = vor.u32 %v3492_v32, %v3030_v59  ;;  %v3480_v29 = vld [vmem:[#allocation2 + $0x48c] sm:$0xf0]  ;;  %v3346_v32 = vld [vmem:[#allocation2 + $0x64] sm:$0xf]  ;;  %v2568_v16 = vld [vmem:[#allocation2 + $0x150] sm:$0xf0] }
 0x150   :  { %v304_v43 = vrot.slane %v303_v35, 1  ;;  %1640 = vmatpush.bf16.msra.mxu1 %v2551_v49  ;;  %1653 = vmatpush.bf16.msra.mxu2 %v2679_v41  ;;  %v3110_v41 = vld [vmem:[#allocation2 + $0x580] sm:$0xf]  ;;  %v2983_v1 = vor.u32 %v3480_v29, %v2982_v50  ;;  %v3508_v59 = vld [vmem:[#allocation2 + $0x56c] sm:$0xf0]  ;;  %v2459_v15 = vor.u32 %v3346_v32, %v2456_v33 }
 0x151   :  { %1628 = vmatpush.bf16.msra.mxu0 %v2407_v54  ;;  %v3111_v53 = vor.u32 %v3512_v51, %v3110_v41  ;;  %v3334_v50 = vld [vmem:[#allocation2 + $0x4] sm:$0xf]  ;;  %v2408_v29 = vld [vmem:[#allocation2 + $0x10] sm:$0xf0] }
 0x152   :  { %v3586_v58 = vpop.eup %3585  ;;  %v305_v63 = vadd.f32 %v304_v43, %v303_v35  ;;  %v2523_v35 = vor.u32 %v3362_v30, %v2520_v38  ;;  %v3520_v43 = vld [vmem:[#allocation2 + $0x5cc] sm:$0xf0]  ;;  %v3378_v30 = vld [vmem:[#allocation2 + $0x164] sm:$0xf]  ;;  %v2584_v38 = vld [vmem:[#allocation2 + $0x170] sm:$0xf0] }
 0x153   :  { %v308_v20 = vmul.f32 %v3586_v58, %v3955_v40  ;;  %v2807_v40 = vor.u32 %v3436_v48, %v2806_v47  ;;  %v3143_v44 = vor.u32 %v3520_v43, %v3142_v19  ;;  %v2635_v58 = vor.u32 %v3390_v45, %v2632_v10  ;;  %v2616_v47 = vld [vmem:[#allocation2 + $0x1b0] sm:$0xf0]  ;;  %v3342_v19 = vld [vmem:[#allocation2 + $0x44] sm:$0xf]  ;;  %v3062_v10 = vld [vmem:[#allocation2 + $0x520] sm:$0xf] }
 0x154   :  { %3587 = vrcp.f32 %v305_v63  ;;  %1641 = vmatpush.bf16.msra.mxu1 %v2535_v56  ;;  %1654 = vmatpush.bf16.msra.mxu2 %v2663_v4  ;;  %v2998_v63 = vld [vmem:[#allocation2 + $0x4a0] sm:$0xf]  ;;  %v2491_v48 = vor.u32 %v3354_v28, %v2488_v14  ;;  %v2619_v49 = vor.u32 %v3386_v37, %v2616_v47  ;;  %v2603_v56 = vor.u32 %v3382_v55, %v2600_v3  ;;  %v3476_v4 = vld [vmem:[#allocation2 + $0x46c] sm:$0xf0]  ;;  %v3374_v43 = vld [vmem:[#allocation2 + $0x144] sm:$0xf] }
 0x155   :  { %312 = vperm.xlu0 %3571, %v308_v20   ;;  %1666 = vmatpush.bf16.msra.mxu3 %v2807_v40  ;;  %v2999_v12 = vor.u32 %v3484_v8, %v2998_v63  ;;  %v3516_v20 = vld [vmem:[#allocation2 + $0x5ac] sm:$0xf0]  ;;  %v3350_v40 = vld [vmem:[#allocation2 + $0x84] sm:$0xf]  ;;  %v2571_v45 = vor.u32 %v3374_v43, %v2568_v16  ;;  %v2536_v51 = vld [vmem:[#allocation2 + $0x110] sm:$0xf0] }
 0x156   :  { %1673 = vmatpush.bf16.msrb.mxu0 %v3031_v60  ;;  %v3127_v18 = vor.u32 %v3516_v20, %v3126_v17  ;;  %v2475_v54 = vor.u32 %v3350_v40, %v2472_v52  ;;  %v3338_v63 = vld [vmem:[#allocation2 + $0x24] sm:$0xf]  ;;  %v2552_v20 = vld [vmem:[#allocation2 + $0x130] sm:$0xf0]  ;;  %v3464_v14 = vld [vmem:[#allocation2 + $0x40c] sm:$0xf0]  ;;  %v2411_v52 = vor.u32 %v3334_v50, %v2408_v29 }
 0x157   :  { %v3370_v17 = vld [vmem:[#allocation2 + $0x124] sm:$0xf] }
 0x158   :  { %1686 = vmatpush.bf16.msrb.mxu1 %v3159_v39  ;;  %1699 = vmatpush.bf16.msrb.mxu2 %v2523_v35  ;;  %v2950_v39 = vld [vmem:[#allocation2 + $0x440] sm:$0xf]  ;;  %v2587_v35 = vor.u32 %v3378_v30, %v2584_v38  ;;  %v2555_v47 = vor.u32 %v3370_v17, %v2552_v20  ;;  %v3975_v38 = vld [vmem:[#allocation2 + $0x2f0] sm:$0xf0] }
 0x159   :  { %1667 = vmatpush.bf16.msra.mxu3 %v2791_v26 }
 0x15a   :  { %v3588_v57 = vpop.eup %3587  ;;  %1674 = vmatpush.bf16.msrb.mxu0 %v3015_v36  ;;  %v2440_v36 = vld [vmem:[#allocation2 + $0x50] sm:$0xf0] }
 0x15b   :  { %v309_v25 = vmul.f32 %v3588_v57, %v3959_v11  ;;  %v2651_v11 = vor.u32 %v3394_v61, %v2648_v42  ;;  %v2966_v57 = vld [vmem:[#allocation2 + $0x460] sm:$0xf]  ;;  %v3472_v61 = vld [vmem:[#allocation2 + $0x44c] sm:$0xf0]  ;;  %v2443_v62 = vor.u32 %v3342_v19, %v2440_v36 }
 0x15c   :  { %1687 = vmatpush.bf16.msrb.mxu1 %v3143_v44  ;;  %1700 = vmatpush.bf16.msrb.mxu2 %v2507_v27  ;;  %v2967_v26 = vor.u32 %v3476_v4, %v2966_v57  ;;  %v3078_v42 = vld [vmem:[#allocation2 + $0x540] sm:$0xf]  ;;  %v2951_v6 = vor.u32 %v3472_v61, %v2950_v39  ;;  %v3468_v27 = vld [vmem:[#allocation2 + $0x42c] sm:$0xf0] }
 0x15d   :  { %317 = vperm.xlu1 %3572, %v309_v25   ;;  %1712 = vmatpush.bf16.msrb.mxu3 %v2651_v11  ;;  %v3094_v25 = vld [vmem:[#allocation2 + $0x560] sm:$0xf]  ;;  %v3504_v11 = vld [vmem:[#allocation2 + $0x54c] sm:$0xf0] }
 0x15e   :  { %1675 = vmatpush.bf16.msrb.mxu0 %v2999_v12  ;;  %v3095_v60 = vor.u32 %v3508_v59, %v3094_v25  ;;  %v3079_v9 = vor.u32 %v3504_v11, %v3078_v42  ;;  %v2934_v44 = vld [vmem:[#allocation2 + $0x420] sm:$0xf]  ;;  %v2424_v12 = vld [vmem:[#allocation2 + $0x30] sm:$0xf0] }
 0x15f   :  { %v2935_v8 = vor.u32 %v3468_v27, %v2934_v44  ;;  %v2427_v37 = vor.u32 %v3338_v63, %v2424_v12 }
 0x160   :  { %1688 = vmatpush.bf16.msrb.mxu1 %v3127_v18  ;;  %1701 = vmatpush.bf16.msrb.mxu2 %v2491_v48  ;;  %v2918_v18 = vld [vmem:[#allocation2 + $0x400] sm:$0xf] }
 0x161   :  { %1713 = vmatpush.bf16.msrb.mxu3 %v2635_v58  ;;  %v3500_v58 = vld [vmem:[#allocation2 + $0x52c] sm:$0xf0]  ;;  %v3046_v48 = vld [vmem:[#allocation2 + $0x500] sm:$0xf]  ;;  %v2919_v41 = vor.u32 %v3464_v14, %v2918_v18 }
 0x162   :  { %1676 = vmatpush.bf16.msrb.mxu0 %v2983_v1  ;;  %v3063_v28 = vor.u32 %v3500_v58, %v3062_v10  ;;  %v3366_v1 = vld [vmem:[#allocation2 + $0x104] sm:$0xf] }
 0x164   :  { %1689 = vmatpush.bf16.msrb.mxu1 %v3111_v53  ;;  %1702 = vmatpush.bf16.msrb.mxu2 %v2475_v54  ;;  %v2539_v53 = vor.u32 %v3366_v1, %v2536_v51  ;;  %v2331_v54 = vlaneseq }
 0x165   :  { %1714 = vmatpush.bf16.msrb.mxu3 %v2619_v49  ;;  %v3496_v49 = vld [vmem:[#allocation2 + $0x50c] sm:$0xf0] }
 0x166   :  { %1677 = vmatpush.bf16.msrb.mxu0 %v2967_v26  ;;  %v3047_v40 = vor.u32 %v3496_v49, %v3046_v48  ;;  %v3971_v59 = vand.u32 127, %v2331_v54 }
 0x168   :  { %1690 = vmatpush.bf16.msrb.mxu1 %v3095_v60  ;;  %1703 = vmatpush.bf16.msrb.mxu2 %v2459_v15  ;;  %v3973_v60 = vld [vmem:[#allocation2 + $0x2e4] sm:$0xf]  ;;  %vm2333_vm12 = vcmp.lt.s32.totalorder %v3971_v59, 3  ;;  %vm2361_vm14 = vcmp.ge.s32.totalorder %v3971_v59, 3  ;;  %vm2362_vm15 = vcmp.lt.s32.totalorder %v3971_v59, 5 }
 0x169   :  { %1715 = vmatpush.bf16.msrb.mxu3 %v2603_v56  ;;  %vm2363_vm0 = vmand %vm2361_vm14, %vm2362_vm15 }
 0x16a   :  { %1678 = vmatpush.bf16.msrb.mxu0 %v2951_v6 }
 0x16c   :  { %1691 = vmatpush.bf16.msrb.mxu1 %v3079_v9  ;;  %1704 = vmatpush.bf16.msrb.mxu2 %v2443_v62 }
 0x16d   :  { %1716 = vmatpush.bf16.msrb.mxu3 %v2587_v35 }
 0x16e   :  { %1679 = vmatpush.bf16.msrb.mxu0 %v2935_v8 }
 0x170   :  { %1692 = vmatpush.bf16.msrb.mxu1 %v3063_v28  ;;  %1705 = vmatpush.bf16.msrb.mxu2 %v2427_v37 }
 0x171   :  { %1717 = vmatpush.bf16.msrb.mxu3 %v2571_v45 }
 0x172   :  { %1680 = vmatpush.bf16.msrb.mxu0 %v2919_v41 }
 0x174   :  { %1693 = vmatpush.bf16.msrb.mxu1 %v3047_v40  ;;  %1706 = vmatpush.bf16.msrb.mxu2 %v2411_v52 }
 0x175   :  { %1718 = vmatpush.bf16.msrb.mxu3 %v2555_v47 }
 0x179   :  { %1719 = vmatpush.bf16.msrb.mxu3 %v2539_v53 }
 0x1c7   :  { %v313_v55 = vpop.permute.xlu0 %312 }
 0x1c8   :  { %v320_v3 = vmul.f32 %v313_v55, %v3844_v0  ;;  %v321_v56 = vmul.f32 %v313_v55, %v3848_v2  ;;  %v322_v57 = vmul.f32 %v313_v55, %v3852_v7  ;;  %v323_v4 = vmul.f32 %v313_v55, %v3859_v13 }
 0x1c9   :  { %v324_v25 = vmul.f32 %v313_v55, %v3875_v46  ;;  %v325_v26 = vmul.f32 %v313_v55, %v3879_v22  ;;  %v2391_v46 = vperm.slane %v313_v55, %v3971_v59  ;;  %v2779_v22 = vor.u32 %v3973_v60, %v3975_v38 }
 0x1ca   :  { %v332_v32 = vrot.slane %v320_v3, 4  ;;  %v338_v33 = vrot.slane %v321_v56, 4  ;;  %v344_v15 = vrot.slane %v322_v57, 4  ;;  %v350_v0 = vrot.slane %v323_v4, 4 }
 0x1cb   :  { %v356_v30 = vrot.slane %v324_v25, 4  ;;  %v362_v2 = vrot.slane %v325_v26, 4 }
 0x1cc   :  { %v333_v7 = vadd.f32 %v332_v32, %v320_v3  ;;  %v339_v13 = vadd.f32 %v338_v33, %v321_v56  ;;  %v345_v35 = vadd.f32 %v344_v15, %v322_v57  ;;  %v351_v61 = vadd.f32 %v350_v0, %v323_v4 }
 0x1cd   :  { %v3980_v42 = vadd.f32 %v356_v30, %v324_v25  ;;  %v3982_v11 = vadd.f32 %v362_v2, %v325_v26 }
 0x1ce   :  { %v334_v39 = vrot.slane %v333_v7, 2  ;;  %v340_v62 = vrot.slane %v339_v13, 2  ;;  %v346_v8 = vrot.slane %v345_v35, 2  ;;  %v352_v28 = vrot.slane %v351_v61, 2 }
 0x1cf   :  { %v318_v6 = vpop.permute.xlu1 %317 }
 0x1d0   :  { %v326_v9 = vmul.f32 %v318_v6, %v3902_v21  ;;  %v327_v19 = vmul.f32 %v318_v6, %v3906_v23  ;;  %v328_v36 = vmul.f32 %v318_v6, %v3910_v24  ;;  %v329_v43 = vmul.f32 %v318_v6, %v3919_v31 }
 0x1d1   :  { %v330_v16 = vmul.f32 %v318_v6, %v3929_v5  ;;  %v2392_v44 = vperm.slane %v318_v6, %v3971_v59  ;;  %v335_v27 = vadd.f32 %v334_v39, %v333_v7  ;;  %v331_v12 = vmul.f32 %v318_v6, %v3936_v34 }
 0x1d2   :  { %v368_v45 = vrot.slane %v326_v9, 4  ;;  %v374_v10 = vrot.slane %v327_v19, 4  ;;  %v380_v58 = vrot.slane %v328_v36, 4  ;;  %v386_v63 = vrot.slane %v329_v43, 4 }
 0x1d3   :  { %v2393_v21 = vsel %vm642_vm10, %v2392_v44, %v2391_v46  ;;  %v336_v23 = vrot.slane %v335_v27, 1  ;;  %v358_v5 = vrot.slane %v3980_v42, 2  ;;  %v392_v18 = vrot.slane %v330_v16, 4  ;;  %v3458_v44 = vld [vmem:[#allocation2 + $0x3e4] sm:$0xf] }
 0x1d4   :  { %v369_v17 = vadd.f32 %v368_v45, %v326_v9  ;;  %v375_v24 = vadd.f32 %v374_v10, %v327_v19  ;;  %v381_v20 = vadd.f32 %v380_v58, %v328_v36  ;;  %v387_v31 = vadd.f32 %v386_v63, %v329_v43 }
 0x1d5   :  { %v2396_v14 = vsel %vm2395_vm11, %v2393_v21, 0.0  ;;  %v364_v34 = vrot.slane %v3982_v11, 2  ;;  %v398_v50 = vrot.slane %v331_v12, 4  ;;  %v337_v29 = vadd.f32 %v336_v23, %v335_v27  ;;  %v2904_v27 = vld [vmem:[#allocation2 + $0x3f0] sm:$0xf0] }
 0x1d6   :  { %v370_v37 = vrot.slane %v369_v17, 2  ;;  %v376_v47 = vrot.slane %v375_v24, 2  ;;  %v382_v48 = vrot.slane %v381_v20, 2  ;;  %v388_v49 = vrot.slane %v387_v31, 2  ;;  %3333 = vst [vmem:[%s4212_s11 + $0x4] sm:$0x3] %v2396_v14 }
 0x1d7   :  { %v341_v41 = vadd.f32 %v340_v62, %v339_v13  ;;  %v347_v40 = vadd.f32 %v346_v8, %v345_v35  ;;  %v3998_v53 = vadd.f32 %v392_v18, %v330_v16  ;;  %v353_v55 = vadd.f32 %v352_v28, %v351_v61  ;;  %v3490_v8 = vld [vmem:[#allocation2 + $0x4e4] sm:$0xf]  ;;  %v3032_v21 = vld [vmem:[#allocation2 + $0x4f0] sm:$0xf0] }
 0x1d8   :  { %v371_v1 = vadd.f32 %v370_v37, %v369_v17  ;;  %v377_v51 = vadd.f32 %v376_v47, %v375_v24  ;;  %v383_v52 = vadd.f32 %v382_v48, %v381_v20  ;;  %v389_v3 = vadd.f32 %v388_v49, %v387_v31  ;;  %v3522_v20 = vld [vmem:[#allocation2 + $0x5e4] sm:$0xf]  ;;  %v3160_v31 = vld [vmem:[#allocation2 + $0x5f0] sm:$0xf0] }
 0x1d9   :  { %v342_v54 = vrot.slane %v341_v41, 1  ;;  %v348_v4 = vrot.slane %v347_v40, 1  ;;  %v404_v26 = vpack.c.bf16 %v337_v29, %v337_v29  ;;  %v354_v33 = vrot.slane %v353_v55, 1  ;;  %v3422_v29 = vld [vmem:[#allocation2 + $0x2c4] sm:$0xf] }
 0x1da   :  { %v372_v56 = vrot.slane %v371_v1, 1  ;;  %v378_v57 = vrot.slane %v377_v51, 1  ;;  %v384_v25 = vrot.slane %v383_v52, 1  ;;  %v390_v15 = vrot.slane %v389_v3, 1 }
 0x1db   :  { %v343_v32 = vadd.f32 %v342_v54, %v341_v41  ;;  %v349_v2 = vadd.f32 %v348_v4, %v347_v40  ;;  %v399_v13 = vadd.f32 %v398_v50, %v331_v12  ;;  %v355_v46 = vadd.f32 %v354_v33, %v353_v55  ;;  %v2760_v41 = vld [vmem:[#allocation2 + $0x2d0] sm:$0xf0]  ;;  %v3486_v55 = vld [vmem:[#allocation2 + $0x4c4] sm:$0xf] }
 0x1dc   :  { %v373_v0 = vadd.f32 %v372_v56, %v371_v1  ;;  %v379_v30 = vadd.f32 %v378_v57, %v377_v51  ;;  %v385_v7 = vadd.f32 %v384_v25, %v383_v52  ;;  %v391_v35 = vadd.f32 %v390_v15, %v389_v3  ;;  %v3454_v1 = vld [vmem:[#allocation2 + $0x3c4] sm:$0xf]  ;;  %v2888_v54 = vld [vmem:[#allocation2 + $0x3d0] sm:$0xf0] }
 0x1dd   :  { %v405_v39 = vpack.c.bf16 %v343_v32, %v343_v32  ;;  %v406_v61 = vpack.c.bf16 %v349_v2, %v349_v2  ;;  %v630_v36 = vunpack.c.l.b16 %v404_v26  ;;  %v407_v62 = vpack.c.bf16 %v355_v46, %v355_v46  ;;  %v3016_v3 = vld [vmem:[#allocation2 + $0x4d0] sm:$0xf0]  ;;  %v3518_v57 = vld [vmem:[#allocation2 + $0x5c4] sm:$0xf] }
 0x1de   :  { %v410_v6 = vpack.c.bf16 %v373_v0, %v373_v0  ;;  %v411_v9 = vpack.c.bf16 %v379_v30, %v379_v30  ;;  %v412_v19 = vpack.c.bf16 %v385_v7, %v385_v7  ;;  %v413_v16 = vpack.c.bf16 %v391_v35, %v391_v35  ;;  %v3144_v4 = vld [vmem:[#allocation2 + $0x5d0] sm:$0xf0]  ;;  %v3418_v25 = vld [vmem:[#allocation2 + $0x2a4] sm:$0xf] }
 0x1df   :  { %v631_v43 = vunpack.c.l.b16 %v405_v39  ;;  %v632_v58 = vunpack.c.l.b16 %v406_v61  ;;  %v394_v12 = vrot.slane %v3998_v53, 2  ;;  %v400_v23 = vrot.slane %v399_v13, 2  ;;  %v3000_v35 = vld [vmem:[#allocation2 + $0x4b0] sm:$0xf0] }
 0x1e0   :  { %v636_v45 = vunpack.c.l.b16 %v410_v6  ;;  %v637_v10 = vunpack.c.l.b16 %v411_v9  ;;  %v638_v63 = vunpack.c.l.b16 %v412_v19  ;;  %v633_v17 = vunpack.c.l.b16 %v407_v62  ;;  %v3514_v6 = vld [vmem:[#allocation2 + $0x5a4] sm:$0xf]  ;;  %v3128_v9 = vld [vmem:[#allocation2 + $0x5b0] sm:$0xf0] }
 0x1e1   :  { %v639_v24 = vunpack.c.l.b16 %v413_v16  ;;  %v2907_v37 = vor.u32 %v3458_v44, %v2904_v27  ;;  %v3035_v40 = vor.u32 %v3490_v8, %v3032_v21  ;;  %v3163_v52 = vor.u32 %v3522_v20, %v3160_v31  ;;  %v2728_v62 = vld [vmem:[#allocation2 + $0x290] sm:$0xf0]  ;;  %v3446_v16 = vld [vmem:[#allocation2 + $0x384] sm:$0xf] }
 0x1e2   :  { %v643_v28 = vsel %vm642_vm10, %v636_v45, %v630_v36  ;;  %v644_v18 = vsel %vm642_vm10, %v637_v10, %v631_v43  ;;  %v645_v14 = vsel %vm642_vm10, %v638_v63, %v632_v58  ;;  %v359_v56 = vadd.f32 %v358_v5, %v3980_v42  ;;  %v2744_v42 = vld [vmem:[#allocation2 + $0x2b0] sm:$0xf0]  ;;  %v3450_v5 = vld [vmem:[#allocation2 + $0x3a4] sm:$0xf] }
 0x1e3   :  { %v4004_v47 = vpack.c.b16 %v643_v28, %v643_v28  ;;  %v4006_v48 = vpack.c.b16 %v644_v18, %v644_v18  ;;  %v4008_v49 = vpack.c.b16 %v645_v14, %v645_v14  ;;  %v646_v50 = vsel %vm642_vm10, %v639_v24, %v633_v17  ;;  %v3414_v43 = vld [vmem:[#allocation2 + $0x284] sm:$0xf]  ;;  %v2856_v63 = vld [vmem:[#allocation2 + $0x390] sm:$0xf0] }
 0x1e4   :  { %v4011_v51 = vpack.c.b16 %v646_v50, %v646_v50  ;;  %v395_v26 = vadd.f32 %v394_v12, %v3998_v53  ;;  %v365_v32 = vadd.f32 %v364_v34, %v3982_v11  ;;  %v401_v33 = vadd.f32 %v400_v23, %v399_v13  ;;  %v2872_v53 = vld [vmem:[#allocation2 + $0x3b0] sm:$0xf0]  ;;  %v3482_v13 = vld [vmem:[#allocation2 + $0x4a4] sm:$0xf] }
 0x1e5   :  { %1629 = vmatmul.bf16.vlgmr.msra.gmra.mxu0 %v4004_v47  ;;  %1642 = vmatmul.bf16.vlgmr.msra.gmra.mxu1 %v4006_v48  ;;  %v2763_v15 = vor.u32 %v3422_v29, %v2760_v41  ;;  %v360_v0 = vrot.slane %v359_v56, 1  ;;  %v2891_v30 = vor.u32 %v3454_v1, %v2888_v54  ;;  %v3019_v11 = vor.u32 %v3486_v55, %v3016_v3  ;;  %v3478_v8 = vld [vmem:[#allocation2 + $0x484] sm:$0xf]  ;;  %v2984_v21 = vld [vmem:[#allocation2 + $0x490] sm:$0xf0] }
 0x1e6   :  { %1655 = vmatmul.bf16.vlgmr.msra.gmra.mxu2 %v4008_v49  ;;  %1668 = vmatmul.bf16.vlgmr.msra.gmra.mxu3 %v4011_v51  ;;  %v396_v2 = vrot.slane %v395_v26, 1  ;;  %v366_v7 = vrot.slane %v365_v32, 1  ;;  %v402_v39 = vrot.slane %v401_v33, 1  ;;  %v3147_v34 = vor.u32 %v3518_v57, %v3144_v4  ;;  %v3510_v12 = vld [vmem:[#allocation2 + $0x584] sm:$0xf] }
 0x1e7   :  { %1725 = vmatpush.bf16.msra.mxu0 %v2779_v22  ;;  %1738 = vmatpush.bf16.msra.mxu1 %v2907_v37  ;;  %v361_v46 = vadd.f32 %v360_v0, %v359_v56  ;;  %v2747_v60 = vor.u32 %v3418_v25, %v2744_v42  ;;  %v2875_v38 = vor.u32 %v3450_v5, %v2872_v53  ;;  %v3112_v23 = vld [vmem:[#allocation2 + $0x590] sm:$0xf0]  ;;  %v3410_v37 = vld [vmem:[#allocation2 + $0x264] sm:$0xf] }
 0x1e8   :  { %1751 = vmatpush.bf16.msra.mxu2 %v3035_v40  ;;  %1764 = vmatpush.bf16.msra.mxu3 %v3163_v52  ;;  %v397_v61 = vadd.f32 %v396_v2, %v395_v26  ;;  %v367_v19 = vadd.f32 %v366_v7, %v365_v32  ;;  %v403_v36 = vadd.f32 %v402_v39, %v401_v33  ;;  %v2712_v50 = vld [vmem:[#allocation2 + $0x270] sm:$0xf0]  ;;  %v3442_v40 = vld [vmem:[#allocation2 + $0x364] sm:$0xf] }
 0x1e9   :  { %v408_v22 = vpack.c.bf16 %v361_v46, %v361_v46  ;;  %v3003_v10 = vor.u32 %v3482_v13, %v3000_v35  ;;  %v3131_v58 = vor.u32 %v3514_v6, %v3128_v9  ;;  %v2731_v28 = vor.u32 %v3414_v43, %v2728_v62  ;;  %v2840_v52 = vld [vmem:[#allocation2 + $0x370] sm:$0xf0]  ;;  %v3474_v54 = vld [vmem:[#allocation2 + $0x464] sm:$0xf] }
 0x1ea   :  { %v414_v44 = vpack.c.bf16 %v397_v61, %v397_v61  ;;  %v409_v27 = vpack.c.bf16 %v367_v19, %v367_v19  ;;  %v415_v45 = vpack.c.bf16 %v403_v36, %v403_v36  ;;  %v2859_v18 = vor.u32 %v3446_v16, %v2856_v63  ;;  %v2968_v55 = vld [vmem:[#allocation2 + $0x470] sm:$0xf0]  ;;  %v3506_v3 = vld [vmem:[#allocation2 + $0x564] sm:$0xf] }
 0x1eb   :  { %1726 = vmatpush.bf16.msra.mxu0 %v2763_v15  ;;  %1739 = vmatpush.bf16.msra.mxu1 %v2891_v30  ;;  %v634_v20 = vunpack.c.l.b16 %v408_v22  ;;  %v2987_v14 = vor.u32 %v3478_v8, %v2984_v21  ;;  %v3115_v29 = vor.u32 %v3510_v12, %v3112_v23  ;;  %v3096_v56 = vld [vmem:[#allocation2 + $0x570] sm:$0xf0]  ;;  %v2715_v57 = vor.u32 %v3410_v37, %v2712_v50  ;;  %v3406_v32 = vld [vmem:[#allocation2 + $0x244] sm:$0xf]  ;;  %v2526_v21 = vld [vmem:[#allocation2 + $0xe8] sm:$0xf] }
 0x1ec   :  { %1752 = vmatpush.bf16.msra.mxu2 %v3019_v11  ;;  %1765 = vmatpush.bf16.msra.mxu3 %v3147_v34  ;;  %v640_v17 = vunpack.c.l.b16 %v414_v44  ;;  %v641_v24 = vunpack.c.l.b16 %v415_v45  ;;  %v635_v31 = vunpack.c.l.b16 %v409_v27  ;;  %v2843_v26 = vor.u32 %v3442_v40, %v2840_v52  ;;  %v2696_v33 = vld [vmem:[#allocation2 + $0x250] sm:$0xf0]  ;;  %v3438_v5 = vld [vmem:[#allocation2 + $0x344] sm:$0xf]  ;;  %v3365_v12 = vld [vmem:[#allocation2 + $0xf4] sm:$0xf0] }
 0x1ed   :  { %v2971_v15 = vor.u32 %v3474_v54, %v2968_v55  ;;  %v3099_v42 = vor.u32 %v3506_v3, %v3096_v56  ;;  %v2824_v0 = vld [vmem:[#allocation2 + $0x350] sm:$0xf0]  ;;  %v3470_v30 = vld [vmem:[#allocation2 + $0x444] sm:$0xf]  ;;  %v2699_v39 = vor.u32 %v3406_v32, %v2696_v33  ;;  %v2654_v23 = vld [vmem:[#allocation2 + $0x1e8] sm:$0xf] }
 0x1ee   :  { %v647_v41 = vsel %vm642_vm10, %v640_v17, %v634_v20  ;;  %v648_v1 = vsel %vm642_vm10, %v641_v24, %v635_v31  ;;  %v2952_v53 = vld [vmem:[#allocation2 + $0x450] sm:$0xf0]  ;;  %v3502_v2 = vld [vmem:[#allocation2 + $0x544] sm:$0xf]  ;;  %v2827_v11 = vor.u32 %v3438_v5, %v2824_v0  ;;  %v3397_v17 = vld [vmem:[#allocation2 + $0x1f4] sm:$0xf0] }
 0x1ef   :  { %1727 = vmatpush.bf16.msra.mxu0 %v2747_v60  ;;  %1740 = vmatpush.bf16.msra.mxu1 %v2875_v38  ;;  %v4029_v4 = vpack.c.b16 %v647_v41, %v647_v41  ;;  %v4031_v25 = vpack.c.b16 %v648_v1, %v648_v1  ;;  %v3080_v7 = vld [vmem:[#allocation2 + $0x550] sm:$0xf0]  ;;  %v3402_v34 = vld [vmem:[#allocation2 + $0x224] sm:$0xf]  ;;  %v2955_v46 = vor.u32 %v3470_v30, %v2952_v53  ;;  %v2782_v24 = vld [vmem:[#allocation2 + $0x2e8] sm:$0xf] }
 0x1f0   :  { %1753 = vmatpush.bf16.msra.mxu2 %v3003_v10  ;;  %1766 = vmatpush.bf16.msra.mxu3 %v3131_v58  ;;  %v2680_v13 = vld [vmem:[#allocation2 + $0x230] sm:$0xf0]  ;;  %v3083_v35 = vor.u32 %v3502_v2, %v3080_v7  ;;  %v3434_v6 = vld [vmem:[#allocation2 + $0x324] sm:$0xf]  ;;  %v2655_v41 = vor.u32 %v3397_v17, %v2654_v23  ;;  %v2510_v1 = vld [vmem:[#allocation2 + $0xc8] sm:$0xf] }
 0x1f1   :  { %v2808_v9 = vld [vmem:[#allocation2 + $0x330] sm:$0xf0]  ;;  %v3466_v61 = vld [vmem:[#allocation2 + $0x424] sm:$0xf]  ;;  %v2683_v22 = vor.u32 %v3402_v34, %v2680_v13  ;;  %v3361_v40 = vld [vmem:[#allocation2 + $0xd4] sm:$0xf0] }
 0x1f2   :  { %v2936_v19 = vld [vmem:[#allocation2 + $0x430] sm:$0xf0]  ;;  %v3498_v36 = vld [vmem:[#allocation2 + $0x524] sm:$0xf]  ;;  %v2811_v43 = vor.u32 %v3434_v6, %v2808_v9  ;;  %v2638_v55 = vld [vmem:[#allocation2 + $0x1c8] sm:$0xf]  ;;  %v2511_v33 = vor.u32 %v3361_v40, %v2510_v1 }
 0x1f3   :  { %1728 = vmatpush.bf16.msra.mxu0 %v2731_v28  ;;  %1741 = vmatpush.bf16.msra.mxu1 %v2859_v18  ;;  %v3064_v60 = vld [vmem:[#allocation2 + $0x530] sm:$0xf0]  ;;  %v3398_v38 = vld [vmem:[#allocation2 + $0x204] sm:$0xf]  ;;  %v2939_v27 = vor.u32 %v3466_v61, %v2936_v19  ;;  %v3429_v28 = vld [vmem:[#allocation2 + $0x2f4] sm:$0xf0] }
 0x1f4   :  { %1754 = vmatpush.bf16.msra.mxu2 %v2987_v14  ;;  %1767 = vmatpush.bf16.msra.mxu3 %v3115_v29  ;;  %v2664_v62 = vld [vmem:[#allocation2 + $0x210] sm:$0xf0]  ;;  %v3430_v16 = vld [vmem:[#allocation2 + $0x304] sm:$0xf]  ;;  %v3067_v45 = vor.u32 %v3498_v36, %v3064_v60  ;;  %v2910_v18 = vld [vmem:[#allocation2 + $0x3e8] sm:$0xf]  ;;  %v2527_v29 = vor.u32 %v3365_v12, %v2526_v21  ;;  %v2783_v52 = vor.u32 %v3429_v28, %v2782_v24 }
 0x1f5   :  { %1681 = vmatmul.bf16.vlgmr.msrb.gmra.mxu0 %v4029_v4  ;;  %1694 = vmatmul.bf16.vlgmr.msrb.gmra.mxu1 %v4031_v25  ;;  %v2792_v44 = vld [vmem:[#allocation2 + $0x310] sm:$0xf0]  ;;  %v3462_v10 = vld [vmem:[#allocation2 + $0x404] sm:$0xf]  ;;  %v2667_v20 = vor.u32 %v3398_v38, %v2664_v62  ;;  %v3461_v14 = vld [vmem:[#allocation2 + $0x3f4] sm:$0xf0] }
 0x1f6   :  { %1707 = vmatmul.bf16.vlgmr.msrb.gmra.mxu2 %v4004_v47  ;;  %1720 = vmatmul.bf16.vlgmr.msrb.gmra.mxu3 %v4006_v48  ;;  %v2920_v58 = vld [vmem:[#allocation2 + $0x410] sm:$0xf0]  ;;  %v3494_v63 = vld [vmem:[#allocation2 + $0x504] sm:$0xf]  ;;  %v2795_v31 = vor.u32 %v3430_v16, %v2792_v44  ;;  %v2911_v54 = vor.u32 %v3461_v14, %v2910_v18  ;;  %v3393_v3 = vld [vmem:[#allocation2 + $0x1d4] sm:$0xf0] }
 0x1f7   :  { %1729 = vmatpush.bf16.msra.mxu0 %v2715_v57  ;;  %1742 = vmatpush.bf16.msra.mxu1 %v2843_v26  ;;  %v3048_v8 = vld [vmem:[#allocation2 + $0x510] sm:$0xf0]  ;;  %v2923_v37 = vor.u32 %v3462_v10, %v2920_v58  ;;  %v2766_v56 = vld [vmem:[#allocation2 + $0x2c8] sm:$0xf]  ;;  %v3425_v57 = vld [vmem:[#allocation2 + $0x2d4] sm:$0xf0] }
 0x1f8   :  { %1755 = vmatpush.bf16.msra.mxu2 %v2971_v15  ;;  %1768 = vmatpush.bf16.msra.mxu3 %v3099_v42  ;;  %v3051_v50 = vor.u32 %v3494_v63, %v3048_v8  ;;  %v2894_v26 = vld [vmem:[#allocation2 + $0x3c8] sm:$0xf]  ;;  %v3457_v32 = vld [vmem:[#allocation2 + $0x3d4] sm:$0xf0]  ;;  %v2639_v15 = vor.u32 %v3393_v3, %v2638_v55  ;;  %v2767_v0 = vor.u32 %v3425_v57, %v2766_v56 }
 0x1f9   :  { %v2494_v42 = vld [vmem:[#allocation2 + $0xa8] sm:$0xf]  ;;  %v3357_v5 = vld [vmem:[#allocation2 + $0xb4] sm:$0xf0]  ;;  %v2895_v30 = vor.u32 %v3457_v32, %v2894_v26 }
 0x1fa   :  { %v2622_v53 = vld [vmem:[#allocation2 + $0x1a8] sm:$0xf]  ;;  %v3389_v2 = vld [vmem:[#allocation2 + $0x1b4] sm:$0xf0]  ;;  %v2495_v13 = vor.u32 %v3357_v5, %v2494_v42 }
 0x1fb   :  { %1730 = vmatpush.bf16.msra.mxu0 %v2699_v39  ;;  %1743 = vmatpush.bf16.msra.mxu1 %v2827_v11  ;;  %v2750_v7 = vld [vmem:[#allocation2 + $0x2a8] sm:$0xf]  ;;  %v3421_v39 = vld [vmem:[#allocation2 + $0x2b4] sm:$0xf0] }
 0x1fc   :  { %1756 = vmatpush.bf16.msra.mxu2 %v2955_v46  ;;  %1769 = vmatpush.bf16.msra.mxu3 %v3083_v35  ;;  %v2878_v11 = vld [vmem:[#allocation2 + $0x3a8] sm:$0xf]  ;;  %v3453_v34 = vld [vmem:[#allocation2 + $0x3b4] sm:$0xf0]  ;;  %v2623_v46 = vor.u32 %v3389_v2, %v2622_v53  ;;  %v2751_v9 = vor.u32 %v3421_v39, %v2750_v7 }
 0x1fd   :  { %v2478_v35 = vld [vmem:[#allocation2 + $0x88] sm:$0xf]  ;;  %v3353_v6 = vld [vmem:[#allocation2 + $0x94] sm:$0xf0]  ;;  %v2879_v61 = vor.u32 %v3453_v34, %v2878_v11 }
 0x1fe   :  { %v2606_v19 = vld [vmem:[#allocation2 + $0x188] sm:$0xf]  ;;  %v3385_v36 = vld [vmem:[#allocation2 + $0x194] sm:$0xf0]  ;;  %v2479_v62 = vor.u32 %v3353_v6, %v2478_v35 }
 0x1ff   :  { %1731 = vmatpush.bf16.msra.mxu0 %v2683_v22  ;;  %1744 = vmatpush.bf16.msra.mxu1 %v2811_v43  ;;  %v2734_v60 = vld [vmem:[#allocation2 + $0x288] sm:$0xf]  ;;  %v3417_v38 = vld [vmem:[#allocation2 + $0x294] sm:$0xf0]  ;;  %v2607_v16 = vor.u32 %v3385_v36, %v2606_v19  ;;  %v3363_v36 = vld [vmem:[#allocation2 + $0xec] sm:$0xf] }
 0x200   :  { %1757 = vmatpush.bf16.msra.mxu2 %v2939_v27  ;;  %1770 = vmatpush.bf16.msra.mxu3 %v3067_v45  ;;  %v2862_v22 = vld [vmem:[#allocation2 + $0x388] sm:$0xf]  ;;  %v3449_v43 = vld [vmem:[#allocation2 + $0x394] sm:$0xf0]  ;;  %v2735_v45 = vor.u32 %v3417_v38, %v2734_v60 }
 0x201   :  { %v2462_v44 = vld [vmem:[#allocation2 + $0x68] sm:$0xf]  ;;  %v3349_v27 = vld [vmem:[#allocation2 + $0x74] sm:$0xf0]  ;;  %v2863_v10 = vor.u32 %v3449_v43, %v2862_v22  ;;  %v2528_v22 = vld [vmem:[#allocation2 + $0xf8] sm:$0xf0] }
 0x202   :  { %v2590_v58 = vld [vmem:[#allocation2 + $0x168] sm:$0xf]  ;;  %v3381_v63 = vld [vmem:[#allocation2 + $0x174] sm:$0xf0]  ;;  %v2463_v17 = vor.u32 %v3349_v27, %v2462_v44  ;;  %v3395_v43 = vld [vmem:[#allocation2 + $0x1ec] sm:$0xf] }
 0x203   :  { %1732 = vmatpush.bf16.msra.mxu0 %v2667_v20  ;;  %1745 = vmatpush.bf16.msra.mxu1 %v2795_v31  ;;  %v2718_v8 = vld [vmem:[#allocation2 + $0x268] sm:$0xf]  ;;  %v3413_v21 = vld [vmem:[#allocation2 + $0x274] sm:$0xf0]  ;;  %v2591_v24 = vor.u32 %v3381_v63, %v2590_v58  ;;  %v2531_v63 = vor.u32 %v3363_v36, %v2528_v22 }
 0x204   :  { %1758 = vmatpush.bf16.msra.mxu2 %v2923_v37  ;;  %1771 = vmatpush.bf16.msra.mxu3 %v3051_v50  ;;  %v2846_v12 = vld [vmem:[#allocation2 + $0x368] sm:$0xf]  ;;  %v3445_v23 = vld [vmem:[#allocation2 + $0x374] sm:$0xf0]  ;;  %v2719_v28 = vor.u32 %v3413_v21, %v2718_v8 }
 0x205   :  { %v2446_v20 = vld [vmem:[#allocation2 + $0x48] sm:$0xf]  ;;  %v3345_v31 = vld [vmem:[#allocation2 + $0x54] sm:$0xf0]  ;;  %v2847_v18 = vor.u32 %v3445_v23, %v2846_v12  ;;  %v3359_v23 = vld [vmem:[#allocation2 + $0xcc] sm:$0xf] }
 0x206   :  { %1733 = vmatmul.bf16.vlgmr.msra.gmra.mxu0 %v4008_v49  ;;  %1746 = vmatmul.bf16.vlgmr.msra.gmra.mxu1 %v4011_v51  ;;  %v2574_v14 = vld [vmem:[#allocation2 + $0x148] sm:$0xf]  ;;  %v3377_v37 = vld [vmem:[#allocation2 + $0x154] sm:$0xf0]  ;;  %v2447_v40 = vor.u32 %v3345_v31, %v2446_v20  ;;  %v2640_v20 = vld [vmem:[#allocation2 + $0x1d8] sm:$0xf0] }
 0x207   :  { %1777 = vmatpush.bf16.msrb.mxu0 %v2527_v29  ;;  %1790 = vmatpush.bf16.msrb.mxu1 %v2655_v41  ;;  %v2702_v50 = vld [vmem:[#allocation2 + $0x248] sm:$0xf]  ;;  %v3409_v29 = vld [vmem:[#allocation2 + $0x254] sm:$0xf0] }
 0x208   :  { %1803 = vmatpush.bf16.msrb.mxu2 %v2783_v52  ;;  %1816 = vmatpush.bf16.msrb.mxu3 %v2911_v54  ;;  %v2830_v41 = vld [vmem:[#allocation2 + $0x348] sm:$0xf]  ;;  %v3441_v1 = vld [vmem:[#allocation2 + $0x354] sm:$0xf0]  ;;  %v2575_v52 = vor.u32 %v3377_v37, %v2574_v14  ;;  %v2703_v3 = vor.u32 %v3409_v29, %v2702_v50 }
 0x209   :  { %1759 = vmatmul.bf16.vlgmr.msra.gmra.mxu2 %v4029_v4  ;;  %1772 = vmatmul.bf16.vlgmr.msra.gmra.mxu3 %v4031_v25  ;;  %v2430_v54 = vld [vmem:[#allocation2 + $0x28] sm:$0xf]  ;;  %v3341_v55 = vld [vmem:[#allocation2 + $0x34] sm:$0xf0]  ;;  %v2831_v56 = vor.u32 %v3441_v1, %v2830_v41  ;;  %v3355_v1 = vld [vmem:[#allocation2 + $0xac] sm:$0xf] }
 0x20a   :  { %v2558_v57 = vld [vmem:[#allocation2 + $0x128] sm:$0xf]  ;;  %v3373_v26 = vld [vmem:[#allocation2 + $0x134] sm:$0xf0] }
 0x20b   :  { %1778 = vmatpush.bf16.msrb.mxu0 %v2511_v33  ;;  %1791 = vmatpush.bf16.msrb.mxu1 %v2639_v15  ;;  %v2686_v32 = vld [vmem:[#allocation2 + $0x228] sm:$0xf]  ;;  %v3405_v33 = vld [vmem:[#allocation2 + $0x234] sm:$0xf0] }
 0x20c   :  { %1804 = vmatpush.bf16.msrb.mxu2 %v2767_v0  ;;  %1817 = vmatpush.bf16.msrb.mxu3 %v2895_v30  ;;  %v2814_v15 = vld [vmem:[#allocation2 + $0x328] sm:$0xf]  ;;  %v3437_v42 = vld [vmem:[#allocation2 + $0x334] sm:$0xf0]  ;;  %v2431_v0 = vor.u32 %v3341_v55, %v2430_v54  ;;  %v2559_v30 = vor.u32 %v3373_v26, %v2558_v57  ;;  %v2687_v39 = vor.u32 %v3405_v33, %v2686_v32  ;;  %v2624_v54 = vld [vmem:[#allocation2 + $0x1b8] sm:$0xf0] }
 0x20d   :  { %v2414_v5 = vld [vmem:[#allocation2 + $0x8] sm:$0xf]  ;;  %v3337_v53 = vld [vmem:[#allocation2 + $0x14] sm:$0xf0]  ;;  %v2815_v11 = vor.u32 %v3437_v42, %v2814_v15  ;;  %v3351_v42 = vld [vmem:[#allocation2 + $0x8c] sm:$0xf] }
 0x20e   :  { %v2542_v2 = vld [vmem:[#allocation2 + $0x108] sm:$0xf]  ;;  %v3369_v7 = vld [vmem:[#allocation2 + $0x114] sm:$0xf0]  ;;  %v2415_v60 = vor.u32 %v3337_v53, %v2414_v5  ;;  %v2480_v5 = vld [vmem:[#allocation2 + $0x98] sm:$0xf0] }
 0x20f   :  { %1779 = vmatpush.bf16.msrb.mxu0 %v2495_v13  ;;  %1792 = vmatpush.bf16.msrb.mxu1 %v2623_v46  ;;  %v2670_v34 = vld [vmem:[#allocation2 + $0x208] sm:$0xf]  ;;  %v3401_v13 = vld [vmem:[#allocation2 + $0x214] sm:$0xf0]  ;;  %v2543_v38 = vor.u32 %v3369_v7, %v2542_v2 }
 0x210   :  { %1805 = vmatpush.bf16.msrb.mxu2 %v2751_v9  ;;  %1818 = vmatpush.bf16.msrb.mxu3 %v2879_v61  ;;  %v2798_v46 = vld [vmem:[#allocation2 + $0x308] sm:$0xf]  ;;  %v3433_v35 = vld [vmem:[#allocation2 + $0x314] sm:$0xf0] }
 0x211   :  { %v3038_v6 = vld [vmem:[#allocation2 + $0x4e8] sm:$0xf]  ;;  %v3493_v9 = vld [vmem:[#allocation2 + $0x4f4] sm:$0xf0]  ;;  %v2799_v44 = vor.u32 %v3433_v35, %v2798_v46  ;;  %v3347_v35 = vld [vmem:[#allocation2 + $0x6c] sm:$0xf] }
 0x212   :  { %v3166_v61 = vld [vmem:[#allocation2 + $0x5e8] sm:$0xf]  ;;  %v3525_v19 = vld [vmem:[#allocation2 + $0x5f4] sm:$0xf0]  ;;  %v3039_v27 = vor.u32 %v3493_v9, %v3038_v6  ;;  %v2464_v6 = vld [vmem:[#allocation2 + $0x78] sm:$0xf0] }
 0x213   :  { %1780 = vmatpush.bf16.msrb.mxu0 %v2479_v62  ;;  %1793 = vmatpush.bf16.msrb.mxu1 %v2607_v16  ;;  %v2656_v62 = vld [vmem:[#allocation2 + $0x1f8] sm:$0xf0]  ;;  %v2671_v16 = vor.u32 %v3401_v13, %v2670_v34  ;;  %v3489_v58 = vld [vmem:[#allocation2 + $0x4d4] sm:$0xf0]  ;;  %v3150_v21 = vld [vmem:[#allocation2 + $0x5c8] sm:$0xf]  ;;  %v2467_v22 = vor.u32 %v3347_v35, %v2464_v6 }
 0x214   :  { %1806 = vmatpush.bf16.msrb.mxu2 %v2735_v45  ;;  %1819 = vmatpush.bf16.msrb.mxu3 %v2863_v10  ;;  %v3167_v45 = vor.u32 %v3525_v19, %v3166_v61  ;;  %v3022_v10 = vld [vmem:[#allocation2 + $0x4c8] sm:$0xf]  ;;  %v2659_v8 = vor.u32 %v3395_v43, %v2656_v62  ;;  %v3521_v12 = vld [vmem:[#allocation2 + $0x5d4] sm:$0xf0]  ;;  %v3379_v9 = vld [vmem:[#allocation2 + $0x16c] sm:$0xf] }
 0x215   :  { %v3023_v31 = vor.u32 %v3489_v58, %v3022_v10  ;;  %v3485_v14 = vld [vmem:[#allocation2 + $0x4b4] sm:$0xf0]  ;;  %v3134_v29 = vld [vmem:[#allocation2 + $0x5a8] sm:$0xf]  ;;  %v2592_v61 = vld [vmem:[#allocation2 + $0x178] sm:$0xf0] }
 0x216   :  { %v3517_v41 = vld [vmem:[#allocation2 + $0x5b4] sm:$0xf0]  ;;  %v3118_v33 = vld [vmem:[#allocation2 + $0x588] sm:$0xf]  ;;  %v2595_v43 = vor.u32 %v3379_v9, %v2592_v61  ;;  %v2576_v10 = vld [vmem:[#allocation2 + $0x158] sm:$0xf0] }
 0x217   :  { %1781 = vmatpush.bf16.msrb.mxu0 %v2463_v17  ;;  %1794 = vmatpush.bf16.msrb.mxu1 %v2591_v24  ;;  %v2512_v17 = vld [vmem:[#allocation2 + $0xd8] sm:$0xf0]  ;;  %v3391_v24 = vld [vmem:[#allocation2 + $0x1cc] sm:$0xf]  ;;  %v3481_v57 = vld [vmem:[#allocation2 + $0x494] sm:$0xf0] }
 0x218   :  { %1807 = vmatpush.bf16.msrb.mxu2 %v2719_v28  ;;  %1820 = vmatpush.bf16.msrb.mxu3 %v2847_v18  ;;  %v3151_v28 = vor.u32 %v3521_v12, %v3150_v21  ;;  %v3006_v18 = vld [vmem:[#allocation2 + $0x4a8] sm:$0xf]  ;;  %v2515_v37 = vor.u32 %v3359_v23, %v2512_v17  ;;  %v2643_v50 = vor.u32 %v3391_v24, %v2640_v20  ;;  %v3513_v15 = vld [vmem:[#allocation2 + $0x594] sm:$0xf0]  ;;  %v3339_v20 = vld [vmem:[#allocation2 + $0x2c] sm:$0xf] }
 0x219   :  { %v3007_v55 = vor.u32 %v3485_v14, %v3006_v18  ;;  %v3119_v2 = vor.u32 %v3513_v15, %v3118_v33  ;;  %v2974_v7 = vld [vmem:[#allocation2 + $0x468] sm:$0xf]  ;;  %v3509_v46 = vld [vmem:[#allocation2 + $0x574] sm:$0xf0]  ;;  %v2560_v18 = vld [vmem:[#allocation2 + $0x138] sm:$0xf0] }
 0x21a   :  { %v3102_v13 = vld [vmem:[#allocation2 + $0x568] sm:$0xf]  ;;  %v3469_v21 = vld [vmem:[#allocation2 + $0x434] sm:$0xf0]  ;;  %v2912_v33 = vld [vmem:[#allocation2 + $0x3f8] sm:$0xf0] }
 0x21b   :  { %1782 = vmatpush.bf16.msrb.mxu0 %v2447_v40  ;;  %1795 = vmatpush.bf16.msrb.mxu1 %v2575_v52  ;;  %v2496_v40 = vld [vmem:[#allocation2 + $0xb8] sm:$0xf0]  ;;  %v3387_v52 = vld [vmem:[#allocation2 + $0x1ac] sm:$0xf]  ;;  %v3103_v36 = vor.u32 %v3509_v46, %v3102_v13  ;;  %v3086_v62 = vld [vmem:[#allocation2 + $0x548] sm:$0xf] }
 0x21c   :  { %1808 = vmatpush.bf16.msrb.mxu2 %v2703_v3  ;;  %1821 = vmatpush.bf16.msrb.mxu3 %v2831_v56  ;;  %v3135_v3 = vor.u32 %v3517_v41, %v3134_v29  ;;  %v2990_v56 = vld [vmem:[#allocation2 + $0x488] sm:$0xf]  ;;  %v2499_v26 = vor.u32 %v3355_v1, %v2496_v40  ;;  %v2627_v32 = vor.u32 %v3387_v52, %v2624_v54  ;;  %v3501_v24 = vld [vmem:[#allocation2 + $0x534] sm:$0xf0]  ;;  %v3335_v54 = vld [vmem:[#allocation2 + $0xc] sm:$0xf] }
 0x21d   :  { %v2991_v53 = vor.u32 %v3481_v57, %v2990_v56  ;;  %v3070_v17 = vld [vmem:[#allocation2 + $0x528] sm:$0xf]  ;;  %v3465_v29 = vld [vmem:[#allocation2 + $0x414] sm:$0xf0]  ;;  %v2544_v56 = vld [vmem:[#allocation2 + $0x118] sm:$0xf0] }
 0x21e   :  { %v2926_v14 = vld [vmem:[#allocation2 + $0x408] sm:$0xf]  ;;  %v3497_v1 = vld [vmem:[#allocation2 + $0x514] sm:$0xf0]  ;;  %v3427_v57 = vld [vmem:[#allocation2 + $0x2ec] sm:$0xf] }
 0x21f   :  { %1783 = vmatpush.bf16.msrb.mxu0 %v2431_v0  ;;  %1796 = vmatpush.bf16.msrb.mxu1 %v2559_v30  ;;  %v3383_v0 = vld [vmem:[#allocation2 + $0x18c] sm:$0xf]  ;;  %v2608_v30 = vld [vmem:[#allocation2 + $0x198] sm:$0xf0]  ;;  %v3054_v41 = vld [vmem:[#allocation2 + $0x508] sm:$0xf] }
 0x220   :  { %1809 = vmatpush.bf16.msrb.mxu2 %v2687_v39  ;;  %1822 = vmatpush.bf16.msrb.mxu3 %v2815_v11  ;;  %v3477_v39 = vld [vmem:[#allocation2 + $0x474] sm:$0xf0]  ;;  %v2483_v11 = vor.u32 %v3351_v42, %v2480_v5  ;;  %v2611_v34 = vor.u32 %v3383_v0, %v2608_v30  ;;  %v3491_v15 = vld [vmem:[#allocation2 + $0x4ec] sm:$0xf]  ;;  %v2927_v42 = vor.u32 %v3465_v29, %v2926_v14  ;;  %v3040_v0 = vld [vmem:[#allocation2 + $0x4f8] sm:$0xf0] }
 0x221   :  { %v2975_v19 = vor.u32 %v3477_v39, %v2974_v7  ;;  %v3055_v5 = vor.u32 %v3497_v1, %v3054_v41  ;;  %v3523_v30 = vld [vmem:[#allocation2 + $0x5ec] sm:$0xf]  ;;  %v2768_v13 = vld [vmem:[#allocation2 + $0x2d8] sm:$0xf0]  ;;  %v3043_v46 = vor.u32 %v3491_v15, %v3040_v0 }
 0x222   :  { %v3455_v6 = vld [vmem:[#allocation2 + $0x3cc] sm:$0xf]  ;;  %v2896_v9 = vld [vmem:[#allocation2 + $0x3d8] sm:$0xf0] }
 0x223   :  { %1784 = vmatpush.bf16.msrb.mxu0 %v2415_v60  ;;  %1797 = vmatpush.bf16.msrb.mxu1 %v2543_v38  ;;  %v2958_v60 = vld [vmem:[#allocation2 + $0x448] sm:$0xf]  ;;  %v3473_v38 = vld [vmem:[#allocation2 + $0x454] sm:$0xf0]  ;;  %v3487_v61 = vld [vmem:[#allocation2 + $0x4cc] sm:$0xf] }
 0x224   :  { %1810 = vmatpush.bf16.msrb.mxu2 %v2671_v16  ;;  %1823 = vmatpush.bf16.msrb.mxu3 %v2799_v44  ;;  %v3505_v16 = vld [vmem:[#allocation2 + $0x554] sm:$0xf0]  ;;  %v3343_v44 = vld [vmem:[#allocation2 + $0x4c] sm:$0xf]  ;;  %v2959_v58 = vor.u32 %v3473_v38, %v2958_v60  ;;  %v3152_v60 = vld [vmem:[#allocation2 + $0x5d8] sm:$0xf0] }
 0x225   :  { %v2992_v14 = vld [vmem:[#allocation2 + $0x498] sm:$0xf0]  ;;  %v3411_v29 = vld [vmem:[#allocation2 + $0x26c] sm:$0xf] }
 0x226   :  { %1785 = vmatmul.bf16.vlgmr.msrb.gmra.mxu0 %v4004_v47  ;;  %1798 = vmatmul.bf16.vlgmr.msrb.gmra.mxu1 %v4006_v48  ;;  %v2720_v41 = vld [vmem:[#allocation2 + $0x278] sm:$0xf0]  ;;  %v3439_v0 = vld [vmem:[#allocation2 + $0x34c] sm:$0xf] }
 0x227   :  { %1829 = vmatpush.bf16.msra.mxu0 %v3039_v27  ;;  %1842 = vmatpush.bf16.msra.mxu1 %v3167_v45  ;;  %v2448_v27 = vld [vmem:[#allocation2 + $0x58] sm:$0xf0]  ;;  %v3375_v45 = vld [vmem:[#allocation2 + $0x14c] sm:$0xf] }
 0x228   :  { %1855 = vmatpush.bf16.msra.mxu2 %v2531_v63  ;;  %1868 = vmatpush.bf16.msra.mxu3 %v2659_v8  ;;  %v3087_v63 = vor.u32 %v3505_v16, %v3086_v62  ;;  %v2942_v8 = vld [vmem:[#allocation2 + $0x428] sm:$0xf]  ;;  %v2451_v12 = vor.u32 %v3343_v44, %v2448_v27  ;;  %v2579_v23 = vor.u32 %v3375_v45, %v2576_v10  ;;  %v2752_v62 = vld [vmem:[#allocation2 + $0x2b8] sm:$0xf0]  ;;  %v3451_v27 = vld [vmem:[#allocation2 + $0x3ac] sm:$0xf] }
 0x229   :  { %1811 = vmatmul.bf16.vlgmr.msrb.gmra.mxu2 %v4008_v49  ;;  %1824 = vmatmul.bf16.vlgmr.msrb.gmra.mxu3 %v4011_v51  ;;  %v2880_v45 = vld [vmem:[#allocation2 + $0x3b8] sm:$0xf0]  ;;  %v3483_v10 = vld [vmem:[#allocation2 + $0x4ac] sm:$0xf] }
 0x22a   :  { %v2704_v15 = vld [vmem:[#allocation2 + $0x258] sm:$0xf0] }
 0x22b   :  { %1830 = vmatpush.bf16.msra.mxu0 %v3023_v31  ;;  %1843 = vmatpush.bf16.msra.mxu1 %v3151_v28  ;;  %v2432_v31 = vld [vmem:[#allocation2 + $0x38] sm:$0xf0]  ;;  %v3371_v28 = vld [vmem:[#allocation2 + $0x12c] sm:$0xf] }
 0x22c   :  { %1856 = vmatpush.bf16.msra.mxu2 %v2515_v37  ;;  %1869 = vmatpush.bf16.msra.mxu3 %v2643_v50  ;;  %v2943_v37 = vor.u32 %v3469_v21, %v2942_v8  ;;  %v3071_v50 = vor.u32 %v3501_v24, %v3070_v17  ;;  %v2435_v40 = vor.u32 %v3339_v20, %v2432_v31  ;;  %v3136_v8 = vld [vmem:[#allocation2 + $0x5b8] sm:$0xf0]  ;;  %v3447_v31 = vld [vmem:[#allocation2 + $0x38c] sm:$0xf] }
 0x22d   :  { %v2563_v52 = vor.u32 %v3371_v28, %v2560_v18  ;;  %v2736_v17 = vld [vmem:[#allocation2 + $0x298] sm:$0xf0]  ;;  %v3479_v18 = vld [vmem:[#allocation2 + $0x48c] sm:$0xf] }
 0x22e   :  { %v2864_v28 = vld [vmem:[#allocation2 + $0x398] sm:$0xf0]  ;;  %v2995_v1 = vor.u32 %v3479_v18, %v2992_v14  ;;  %v3540_v18 = vld [vmem:[%s4208_s7 + $0x70] sm:$0xff]  ;;  %v4066_v14 = vld [vmem:[%s4207_s6] sm:$0xf] }
 0x22f   :  { %1831 = vmatpush.bf16.msra.mxu0 %v3007_v55  ;;  %1844 = vmatpush.bf16.msra.mxu1 %v3135_v3  ;;  %v2416_v55 = vld [vmem:[#allocation2 + $0x18] sm:$0xf0]  ;;  %v3367_v3 = vld [vmem:[#allocation2 + $0x10c] sm:$0xf] }
 0x230   :  { %1857 = vmatpush.bf16.msra.mxu2 %v2499_v26  ;;  %1870 = vmatpush.bf16.msra.mxu3 %v2627_v32  ;;  %v2784_v26 = vld [vmem:[#allocation2 + $0x2f8] sm:$0xf0]  ;;  %v3459_v32 = vld [vmem:[#allocation2 + $0x3ec] sm:$0xf]  ;;  %v2547_v7 = vor.u32 %v3367_v3, %v2544_v56 }
 0x231   :  { %v2787_v39 = vor.u32 %v3427_v57, %v2784_v26  ;;  %v2976_v3 = vld [vmem:[#allocation2 + $0x478] sm:$0xf0]  ;;  %v3507_v56 = vld [vmem:[#allocation2 + $0x56c] sm:$0xf]  ;;  %v2723_v26 = vor.u32 %v3411_v29, %v2720_v41 }
 0x232   :  { %v3104_v57 = vld [vmem:[#allocation2 + $0x578] sm:$0xf0] }
 0x233   :  { %1832 = vmatpush.bf16.msra.mxu0 %v2991_v53  ;;  %1845 = vmatpush.bf16.msra.mxu1 %v3119_v2  ;;  %v3168_v53 = vld [vmem:[#allocation2 + $0x5f8] sm:$0xf0]  ;;  %v2419_v2 = vor.u32 %v3335_v54, %v2416_v55  ;;  %v3475_v55 = vld [vmem:[#allocation2 + $0x46c] sm:$0xf] }
 0x234   :  { %1858 = vmatpush.bf16.msra.mxu2 %v2483_v11  ;;  %1871 = vmatpush.bf16.msra.mxu3 %v2611_v34  ;;  %v2915_v11 = vor.u32 %v3459_v32, %v2912_v33  ;;  %v3423_v34 = vld [vmem:[#allocation2 + $0x2cc] sm:$0xf]  ;;  %v3171_v35 = vor.u32 %v3523_v30, %v3168_v53  ;;  %v2848_v54 = vld [vmem:[#allocation2 + $0x378] sm:$0xf0] }
 0x235   :  { %v2771_v38 = vor.u32 %v3423_v34, %v2768_v13  ;;  %v3407_v33 = vld [vmem:[#allocation2 + $0x24c] sm:$0xf]  ;;  %v2832_v30 = vld [vmem:[#allocation2 + $0x358] sm:$0xf0] }
 0x236   :  { %v3471_v53 = vld [vmem:[#allocation2 + $0x44c] sm:$0xf]  ;;  %v2835_v34 = vor.u32 %v3439_v0, %v2832_v30 }
 0x237   :  { %1833 = vmatpush.bf16.msra.mxu0 %v2975_v19  ;;  %1846 = vmatpush.bf16.msra.mxu1 %v3103_v36  ;;  %v3024_v19 = vld [vmem:[#allocation2 + $0x4d8] sm:$0xf0]  ;;  %v3519_v36 = vld [vmem:[#allocation2 + $0x5cc] sm:$0xf] }
 0x238   :  { %1859 = vmatpush.bf16.msra.mxu2 %v2467_v22  ;;  %1872 = vmatpush.bf16.msra.mxu3 %v2595_v43  ;;  %v2899_v22 = vor.u32 %v3455_v6, %v2896_v9  ;;  %v3419_v43 = vld [vmem:[#allocation2 + $0x2ac] sm:$0xf]  ;;  %v3027_v16 = vor.u32 %v3487_v61, %v3024_v19  ;;  %v3155_v44 = vor.u32 %v3519_v36, %v3152_v60  ;;  %v2816_v61 = vld [vmem:[#allocation2 + $0x338] sm:$0xf0] }
 0x239   :  { %v2755_v21 = vor.u32 %v3419_v43, %v2752_v62  ;;  %v3403_v13 = vld [vmem:[#allocation2 + $0x22c] sm:$0xf]  ;;  %v2944_v36 = vld [vmem:[#allocation2 + $0x438] sm:$0xf0] }
 0x23a   :  { %v3435_v9 = vld [vmem:[#allocation2 + $0x32c] sm:$0xf] }
 0x23b   :  { %1834 = vmatpush.bf16.msra.mxu0 %v2959_v58  ;;  %1847 = vmatpush.bf16.msra.mxu1 %v3087_v63  ;;  %v3008_v58 = vld [vmem:[#allocation2 + $0x4b8] sm:$0xf0]  ;;  %v3515_v63 = vld [vmem:[#allocation2 + $0x5ac] sm:$0xf]  ;;  %v2819_v43 = vor.u32 %v3435_v9, %v2816_v61 }
 0x23c   :  { %1860 = vmatpush.bf16.msra.mxu2 %v2451_v12  ;;  %1873 = vmatpush.bf16.msra.mxu3 %v2579_v23  ;;  %v2883_v12 = vor.u32 %v3451_v27, %v2880_v45  ;;  %v3415_v23 = vld [vmem:[#allocation2 + $0x28c] sm:$0xf]  ;;  %v3011_v24 = vor.u32 %v3483_v10, %v3008_v58  ;;  %v3139_v20 = vor.u32 %v3515_v63, %v3136_v8  ;;  %v2800_v10 = vld [vmem:[#allocation2 + $0x318] sm:$0xf0] }
 0x23d   :  { %v3467_v19 = vld [vmem:[#allocation2 + $0x42c] sm:$0xf]  ;;  %v2928_v63 = vld [vmem:[#allocation2 + $0x418] sm:$0xf0] }
 0x23e   :  { %v3499_v60 = vld [vmem:[#allocation2 + $0x52c] sm:$0xf] }
 0x23f   :  { %1835 = vmatpush.bf16.msra.mxu0 %v2943_v37  ;;  %1848 = vmatpush.bf16.msra.mxu1 %v3071_v50  ;;  %v3511_v37 = vld [vmem:[#allocation2 + $0x58c] sm:$0xf]  ;;  %v3120_v50 = vld [vmem:[#allocation2 + $0x598] sm:$0xf0] }
 0x240   :  { %1861 = vmatpush.bf16.msra.mxu2 %v2435_v40  ;;  %1874 = vmatpush.bf16.msra.mxu3 %v2563_v52  ;;  %v3123_v40 = vor.u32 %v3511_v37, %v3120_v50  ;;  %v3443_v52 = vld [vmem:[#allocation2 + $0x36c] sm:$0xf] }
 0x241   :  { %v2851_v32 = vor.u32 %v3443_v52, %v2848_v54  ;;  %v3399_v62 = vld [vmem:[#allocation2 + $0x20c] sm:$0xf]  ;;  %v3529_v54 = vld [vmem:[%s4208_s7 + $0x18] sm:$0xff] }
 0x242   :  { %v3431_v45 = vld [vmem:[#allocation2 + $0x30c] sm:$0xf] }
 0x243   :  { %1836 = vmatpush.bf16.msra.mxu0 %v2927_v42  ;;  %1849 = vmatpush.bf16.msra.mxu1 %v3055_v5  ;;  %v2979_v42 = vor.u32 %v3475_v55, %v2976_v3  ;;  %v3107_v5 = vor.u32 %v3507_v56, %v3104_v57  ;;  %v3463_v58 = vld [vmem:[#allocation2 + $0x40c] sm:$0xf]  ;;  %v3537_v55 = vld [vmem:[%s4208_s7 + $0x58] sm:$0xff]  ;;  %v3528_v56 = vld [vmem:[%s4208_s7 + $0x10] sm:$0xff] }
 0x244   :  { %1862 = vmatpush.bf16.msra.mxu2 %v2419_v2  ;;  %1875 = vmatpush.bf16.msra.mxu3 %v2547_v7  ;;  %v2960_v2 = vld [vmem:[#allocation2 + $0x458] sm:$0xf0]  ;;  %v3503_v7 = vld [vmem:[#allocation2 + $0x54c] sm:$0xf]  ;;  %v3536_v57 = vld [vmem:[%s4208_s7 + $0x50] sm:$0xff] }
 0x245   :  { %v3495_v8 = vld [vmem:[#allocation2 + $0x50c] sm:$0xf] }
 0x246   :  { %1837 = vmatmul.bf16.vlgmr.msra.gmra.mxu0 %v4029_v4  ;;  %1850 = vmatmul.bf16.vlgmr.msra.gmra.mxu1 %v4031_v25  ;;  %v3527_v0 = vld [vmem:[%s4208_s7 + $0x8] sm:$0xff] }
 0x247   :  { %1881 = vmatpush.bf16.msrb.mxu0 %v2787_v39  ;;  %1894 = vmatpush.bf16.msrb.mxu1 %v2915_v11  ;;  %v3088_v39 = vld [vmem:[#allocation2 + $0x558] sm:$0xf0]  ;;  %v2707_v11 = vor.u32 %v3407_v33, %v2704_v15  ;;  %v3535_v30 = vld [vmem:[%s4208_s7 + $0x48] sm:$0xff] }
 0x248   :  { %1907 = vmatpush.bf16.msrb.mxu2 %v3043_v46  ;;  %1920 = vmatpush.bf16.msrb.mxu3 %v3171_v35  ;;  %v2688_v46 = vld [vmem:[#allocation2 + $0x238] sm:$0xf0]  ;;  %v2963_v35 = vor.u32 %v3471_v53, %v2960_v2  ;;  %v3091_v6 = vor.u32 %v3503_v7, %v3088_v39  ;;  %v3526_v2 = vld [vmem:[%s4208_s7] sm:$0xff] }
 0x249   :  { %1863 = vmatmul.bf16.vlgmr.msra.gmra.mxu2 %v4004_v47  ;;  %1876 = vmatmul.bf16.vlgmr.msra.gmra.mxu3 %v4006_v48  ;;  %v2739_v47 = vor.u32 %v3415_v23, %v2736_v17  ;;  %v2867_v48 = vor.u32 %v3447_v31, %v2864_v28  ;;  %v2803_v23 = vor.u32 %v3431_v45, %v2800_v10  ;;  %v3541_v31 = vld [vmem:[%s4208_s7 + $0x78] sm:$0xff]  ;;  %v3532_v28 = vld [vmem:[%s4208_s7 + $0x30] sm:$0xff]  ;;  %v3534_v7 = vld [vmem:[%s4208_s7 + $0x40] sm:$0xff] }
 0x24a   :  { %v2931_v17 = vor.u32 %v3463_v58, %v2928_v63  ;;  %v3548_v10 = vld [vmem:[%s4208_s7 + $0xb0] sm:$0xff]  ;;  %v3547_v63 = vld [vmem:[%s4208_s7 + $0xa8] sm:$0xff] }
 0x24b   :  { %1882 = vmatpush.bf16.msrb.mxu0 %v2771_v38  ;;  %1895 = vmatpush.bf16.msrb.mxu1 %v2899_v22  ;;  %v3072_v38 = vld [vmem:[#allocation2 + $0x538] sm:$0xf0]  ;;  %v2691_v22 = vor.u32 %v3403_v13, %v2688_v46 }
 0x24c   :  { %1908 = vmatpush.bf16.msrb.mxu2 %v3027_v16  ;;  %1921 = vmatpush.bf16.msrb.mxu3 %v3155_v44  ;;  %v2672_v16 = vld [vmem:[#allocation2 + $0x218] sm:$0xf0]  ;;  %v2947_v44 = vor.u32 %v3467_v19, %v2944_v36  ;;  %v3075_v27 = vor.u32 %v3499_v60, %v3072_v38 }
 0x24d   :  { %v3549_v38 = vld [vmem:[%s4208_s7 + $0xb8] sm:$0xff] }
 0x24f   :  { %1883 = vmatpush.bf16.msrb.mxu0 %v2755_v21  ;;  %1896 = vmatpush.bf16.msrb.mxu1 %v2883_v12  ;;  %v3056_v21 = vld [vmem:[#allocation2 + $0x518] sm:$0xf0]  ;;  %v2675_v12 = vor.u32 %v3399_v62, %v2672_v16 }
 0x250   :  { %1909 = vmatpush.bf16.msrb.mxu2 %v3011_v24  ;;  %1922 = vmatpush.bf16.msrb.mxu3 %v3139_v20  ;;  %v3059_v24 = vor.u32 %v3495_v8, %v3056_v21  ;;  %v3533_v20 = vld [vmem:[%s4208_s7 + $0x38] sm:$0xff]  ;;  %v3546_v21 = vld [vmem:[%s4208_s7 + $0xa0] sm:$0xff] }
 0x253   :  { %1884 = vmatpush.bf16.msrb.mxu0 %v2739_v47  ;;  %1897 = vmatpush.bf16.msrb.mxu1 %v2867_v48  ;;  %v610_v47 = vperm.slane %v4066_v14, 0 }
 0x254   :  { %1910 = vmatpush.bf16.msrb.mxu2 %v2995_v1  ;;  %1923 = vmatpush.bf16.msrb.mxu3 %v3123_v40 }
 0x257   :  { %1885 = vmatpush.bf16.msrb.mxu0 %v2723_v26  ;;  %1898 = vmatpush.bf16.msrb.mxu1 %v2851_v32 }
 0x258   :  { %1911 = vmatpush.bf16.msrb.mxu2 %v2979_v42  ;;  %1924 = vmatpush.bf16.msrb.mxu3 %v3107_v5 }
 0x25b   :  { %1886 = vmatpush.bf16.msrb.mxu0 %v2707_v11  ;;  %1899 = vmatpush.bf16.msrb.mxu1 %v2835_v34 }
 0x25c   :  { %1912 = vmatpush.bf16.msrb.mxu2 %v2963_v35  ;;  %1925 = vmatpush.bf16.msrb.mxu3 %v3091_v6  ;;  %v611_v35 = vperm.slane %v4066_v14, 1 }
 0x25f   :  { %1887 = vmatpush.bf16.msrb.mxu0 %v2691_v22  ;;  %1900 = vmatpush.bf16.msrb.mxu1 %v2819_v43 }
 0x260   :  { %1913 = vmatpush.bf16.msrb.mxu2 %v2947_v44  ;;  %1926 = vmatpush.bf16.msrb.mxu3 %v3075_v27 }
 0x262   :  { %v1630_v37 = vpop.f32.mrf.mxu0  ;;  %v1643_v50 = vpop.f32.mrf.mxu1 }
 0x263   :  { %1888 = vmatpush.bf16.msrb.mxu0 %v2675_v12  ;;  %1901 = vmatpush.bf16.msrb.mxu1 %v2803_v23  ;;  %v1631_v48 = vadd.f32 %v1630_v37, %v610_v47 }
 0x264   :  { %1914 = vmatpush.bf16.msrb.mxu2 %v2931_v17  ;;  %1927 = vmatpush.bf16.msrb.mxu3 %v3059_v24  ;;  %v3545_v17 = vld [vmem:[%s4208_s7 + $0x98] sm:$0xff]  ;;  %v3544_v24 = vld [vmem:[%s4208_s7 + $0x90] sm:$0xff] }
 0x265   :  { %v1644_v52 = vadd.f32 %v1643_v50, %v1631_v48  ;;  %v3556_v48 = vld [vmem:[%s4208_s7 + $0xf0] sm:$0xff] }
 0x266   :  { %1889 = vmatmul.bf16.vlgmr.msrb.gmra.mxu0 %v4008_v49  ;;  %1902 = vmatmul.bf16.vlgmr.msrb.gmra.mxu1 %v4011_v51  ;;  %v3531_v49 = vld [vmem:[%s4208_s7 + $0x28] sm:$0xff] }
 0x267   :  { %2197 = vmatpush.bf16.msra.mxu0 %v3533_v20  ;;  %2210 = vmatpush.bf16.msra.mxu1 %v3541_v31  ;;  %v3539_v51 = vld [vmem:[%s4208_s7 + $0x68] sm:$0xff] }
 0x268   :  { %1915 = vmatmul.bf16.vlgmr.msrb.gmra.mxu2 %v4029_v4  ;;  %1928 = vmatmul.bf16.vlgmr.msrb.gmra.mxu3 %v4031_v25  ;;  %v3530_v4 = vld [vmem:[%s4208_s7 + $0x20] sm:$0xff] }
 0x269   :  { %v3538_v25 = vld [vmem:[%s4208_s7 + $0x60] sm:$0xff]  ;;  %v1656_v29 = vpop.f32.mrf.mxu2  ;;  %v1669_v41 = vpop.f32.mrf.mxu3  ;;  %2223 = vmatpush.bf16.msra.mxu2 %v3549_v38 }
 0x26a   :  { %v1632_v1 = vpop.f32.mrf.mxu0  ;;  %v1645_v40 = vpop.f32.mrf.mxu1  ;;  %v1657_v3 = vadd.f32 %v1656_v29, %v1644_v52 }
 0x26b   :  { %2198 = vmatpush.bf16.msra.mxu0 %v3532_v28  ;;  %2211 = vmatpush.bf16.msra.mxu1 %v3540_v18  ;;  %v3543_v28 = vld [vmem:[%s4208_s7 + $0x88] sm:$0xff]  ;;  %v3542_v18 = vld [vmem:[%s4208_s7 + $0x80] sm:$0xff] }
 0x26c   :  { %v1670_v26 = vadd.f32 %v1669_v41, %v1657_v3  ;;  %v3555_v41 = vld [vmem:[%s4208_s7 + $0xe8] sm:$0xff]  ;;  %v3554_v40 = vld [vmem:[%s4208_s7 + $0xe0] sm:$0xff] }
 0x26d   :  { %2224 = vmatpush.bf16.msra.mxu2 %v3548_v10 }
 0x26f   :  { %2199 = vmatpush.bf16.msra.mxu0 %v3531_v49  ;;  %2212 = vmatpush.bf16.msra.mxu1 %v3539_v51  ;;  %v3557_v51 = vld [vmem:[%s4208_s7 + $0xf8] sm:$0xff] }
 0x270   :  { %2236 = vmatpush.bf16.msra.mxu3 %v3557_v51 }
 0x271   :  { %v1658_v32 = vpop.f32.mrf.mxu2  ;;  %v1671_v33 = vpop.f32.mrf.mxu3  ;;  %2225 = vmatpush.bf16.msra.mxu2 %v3547_v63 }
 0x272   :  { %v1682_v15 = vpop.f32.mrf.mxu0  ;;  %v1695_v42 = vpop.f32.mrf.mxu1 }
 0x273   :  { %2200 = vmatpush.bf16.msra.mxu0 %v3530_v4  ;;  %2213 = vmatpush.bf16.msra.mxu1 %v3538_v25  ;;  %v1683_v5 = vadd.f32 %v1682_v15, %v1670_v26  ;;  %v612_v4 = vperm.slane %v4066_v14, 2  ;;  %v3552_v26 = vld [vmem:[%s4208_s7 + $0xd0] sm:$0xff] }
 0x274   :  { %2237 = vmatpush.bf16.msra.mxu3 %v3556_v48  ;;  %v3574_v48 = vld [vmem:[%s4211_s10] ss:$0 sm:$0xff] }
 0x275   :  { %v1696_v53 = vadd.f32 %v1695_v42, %v1683_v5  ;;  %2226 = vmatpush.bf16.msra.mxu2 %v3546_v21  ;;  %v3564_v21 = vld [vmem:[%s4210_s9 + $0x30] sm:$0xff] }
 0x277   :  { %2201 = vmatpush.bf16.msra.mxu0 %v3529_v54  ;;  %2214 = vmatpush.bf16.msra.mxu1 %v3537_v55  ;;  %v1933_v34 = vpack.c.bf16 %v1696_v53, %v1696_v53  ;;  %v3553_v54 = vld [vmem:[%s4208_s7 + $0xd8] sm:$0xff]  ;;  %v3551_v53 = vld [vmem:[%s4208_s7 + $0xc8] sm:$0xff] }
 0x278   :  { %2238 = vmatpush.bf16.msra.mxu3 %v3555_v41 }
 0x279   :  { %v1708_v39 = vpop.f32.mrf.mxu2  ;;  %v1721_v11 = vpop.f32.mrf.mxu3  ;;  %2227 = vmatpush.bf16.msra.mxu2 %v3545_v17  ;;  %v3561_v17 = vld [vmem:[%s4210_s9 + $0x18] sm:$0xff] }
 0x27a   :  { %v1684_v13 = vpop.f32.mrf.mxu0  ;;  %v1697_v46 = vpop.f32.mrf.mxu1  ;;  %v1709_v6 = vadd.f32 %v1708_v39, %v611_v35 }
 0x27b   :  { %2202 = vmatpush.bf16.msra.mxu0 %v3528_v56  ;;  %2215 = vmatpush.bf16.msra.mxu1 %v3536_v57 }
 0x27c   :  { %v1722_v19 = vadd.f32 %v1721_v11, %v1709_v6  ;;  %2239 = vmatpush.bf16.msra.mxu3 %v3554_v40  ;;  %v613_v11 = vperm.slane %v4066_v14, 3  ;;  %v3573_v14 = vld [vmem:[%s4209_s8] ss:$0 sm:$0xff] }
 0x27d   :  { %2228 = vmatpush.bf16.msra.mxu2 %v3544_v24  ;;  %v3560_v24 = vld [vmem:[%s4210_s9 + $0x10] sm:$0xff] }
 0x27f   :  { %2203 = vmatpush.bf16.msra.mxu0 %v3527_v0  ;;  %2216 = vmatpush.bf16.msra.mxu1 %v3535_v30 }
 0x280   :  { %2240 = vmatpush.bf16.msra.mxu3 %v3553_v54 }
 0x281   :  { %v1710_v9 = vpop.f32.mrf.mxu2  ;;  %v1723_v61 = vpop.f32.mrf.mxu3  ;;  %2229 = vmatpush.bf16.msra.mxu2 %v3543_v28  ;;  %v3558_v28 = vld [vmem:[%s4210_s9] sm:$0xff] }
 0x283   :  { %2204 = vmatpush.bf16.msra.mxu0 %v3526_v2  ;;  %2217 = vmatpush.bf16.msra.mxu1 %v3534_v7  ;;  %v1734_v36 = vpop.f32.mrf.mxu0  ;;  %v1747_v60 = vpop.f32.mrf.mxu1  ;;  %v3550_v2 = vld [vmem:[%s4208_s7 + $0xc0] sm:$0xff] }
 0x284   :  { %v1735_v22 = vadd.f32 %v1734_v36, %v1722_v19  ;;  %2241 = vmatpush.bf16.msra.mxu3 %v3552_v26 }
 0x285   :  { %2230 = vmatpush.bf16.msra.mxu2 %v3542_v18 }
 0x286   :  { %2205 = vmatmul.bf16.vlgmr.msra.gmra.mxu0 %v1933_v34  ;;  %v1748_v43 = vadd.f32 %v1747_v60, %v1735_v22 }
 0x288   :  { %2242 = vmatpush.bf16.msra.mxu3 %v3551_v53 }
 0x28b   :  { %v1736_v27 = vpop.f32.mrf.mxu0  ;;  %v1749_v45 = vpop.f32.mrf.mxu1 }
 0x28c   :  { %v1760_v62 = vpop.f32.mrf.mxu2  ;;  %v1773_v16 = vpop.f32.mrf.mxu3  ;;  %2243 = vmatpush.bf16.msra.mxu3 %v3550_v2 }
 0x28d   :  { %v1761_v44 = vadd.f32 %v1760_v62, %v1748_v43 }
 0x28f   :  { %v1774_v58 = vadd.f32 %v1773_v16, %v1761_v44 }
 0x291   :  { %v1934_v8 = vpack.c.bf16 %v1774_v58, %v1774_v58 }
 0x293   :  { %2218 = vmatmul.bf16.vlgmr.msra.gmra.mxu1 %v1934_v8  ;;  %v3565_v8 = vld [vmem:[%s4210_s9 + $0x38] sm:$0xff] }
 0x294   :  { %v1762_v12 = vpop.f32.mrf.mxu2  ;;  %v1775_v23 = vpop.f32.mrf.mxu3  ;;  %2318 = vmatpush.bf16.msrb.mxu0 %v3565_v8 }
 0x295   :  { %v3563_v12 = vld [vmem:[%s4210_s9 + $0x28] sm:$0xff]  ;;  %v3562_v23 = vld [vmem:[%s4210_s9 + $0x20] sm:$0xff] }
 0x298   :  { %2319 = vmatpush.bf16.msrb.mxu0 %v3564_v21 }
 0x29c   :  { %2320 = vmatpush.bf16.msrb.mxu0 %v3563_v12 }
 0x2a0   :  { %2321 = vmatpush.bf16.msrb.mxu0 %v3562_v23 }
 0x2a3   :  { %v1786_v20 = vpop.f32.mrf.mxu0  ;;  %v1799_v31 = vpop.f32.mrf.mxu1 }
 0x2a4   :  { %v1787_v1 = vadd.f32 %v1786_v20, %v612_v4  ;;  %2322 = vmatpush.bf16.msrb.mxu0 %v3561_v17  ;;  %v3559_v20 = vld [vmem:[%s4210_s9 + $0x8] sm:$0xff] }
 0x2a6   :  { %v1800_v52 = vadd.f32 %v1799_v31, %v1787_v1 }
 0x2a8   :  { %2323 = vmatpush.bf16.msrb.mxu0 %v3560_v24 }
 0x2ab   :  { %v1788_v47 = vpop.f32.mrf.mxu0  ;;  %v1801_v49 = vpop.f32.mrf.mxu1 }
 0x2ac   :  { %v1812_v37 = vpop.f32.mrf.mxu2  ;;  %v1825_v50 = vpop.f32.mrf.mxu3  ;;  %2324 = vmatpush.bf16.msrb.mxu0 %v3559_v20 }
 0x2ad   :  { %v1813_v55 = vadd.f32 %v1812_v37, %v1800_v52 }
 0x2af   :  { %v1826_v3 = vadd.f32 %v1825_v50, %v1813_v55 }
 0x2b0   :  { %2325 = vmatpush.bf16.msrb.mxu0 %v3558_v28 }
 0x2b4   :  { %v1814_v25 = vpop.f32.mrf.mxu2  ;;  %v1827_v29 = vpop.f32.mrf.mxu3 }
 0x2c3   :  { %v1838_v56 = vpop.f32.mrf.mxu0  ;;  %v1851_v57 = vpop.f32.mrf.mxu1 }
 0x2c4   :  { %v1839_v32 = vadd.f32 %v1838_v56, %v1826_v3 }
 0x2c6   :  { %v1852_v33 = vadd.f32 %v1851_v57, %v1839_v32 }
 0x2c8   :  { %v1935_v15 = vpack.c.bf16 %v1852_v33, %v1852_v33 }
 0x2ca   :  { %2231 = vmatmul.bf16.vlgmr.msra.gmra.mxu2 %v1935_v15 }
 0x2cb   :  { %v1840_v0 = vpop.f32.mrf.mxu0  ;;  %v1853_v30 = vpop.f32.mrf.mxu1 }
 0x2cc   :  { %v1864_v42 = vpop.f32.mrf.mxu2  ;;  %v1877_v5 = vpop.f32.mrf.mxu3 }
 0x2cd   :  { %v1865_v34 = vadd.f32 %v1864_v42, %v613_v11 }
 0x2cf   :  { %v1878_v13 = vadd.f32 %v1877_v5, %v1865_v34 }
 0x2d4   :  { %v1866_v7 = vpop.f32.mrf.mxu2  ;;  %v1879_v39 = vpop.f32.mrf.mxu3 }
 0x2e3   :  { %v1890_v46 = vpop.f32.mrf.mxu0  ;;  %v1903_v35 = vpop.f32.mrf.mxu1 }
 0x2e4   :  { %v1891_v6 = vadd.f32 %v1890_v46, %v1878_v13 }
 0x2e6   :  { %v1904_v9 = vadd.f32 %v1903_v35, %v1891_v6 }
 0x2eb   :  { %v1916_v61 = vpop.f32.mrf.mxu2  ;;  %v1929_v19 = vpop.f32.mrf.mxu3 }
 0x2ec   :  { %v1917_v36 = vadd.f32 %v1916_v61, %v1904_v9  ;;  %v1892_v60 = vpop.f32.mrf.mxu0  ;;  %v1905_v38 = vpop.f32.mrf.mxu1 }
 0x2ee   :  { %v1930_v22 = vadd.f32 %v1929_v19, %v1917_v36 }
 0x2f0   :  { %v1936_v43 = vpack.c.bf16 %v1930_v22, %v1930_v22 }
 0x2f2   :  { %2244 = vmatmul.bf16.vlgmr.msra.gmra.mxu3 %v1936_v43 }
 0x2f3   :  { %v1918_v62 = vpop.f32.mrf.mxu2  ;;  %v1931_v16 = vpop.f32.mrf.mxu3 }
 0x303   :  { %v2206_v44 = vpop.f32.mrf.mxu0 }
 0x304   :  { %v2207_v45 = vadd.f32 %v3573_v14, %v2206_v44 }
 0x30b   :  { %v2208_v27 = vpop.f32.mrf.mxu0 }
 0x310   :  { %v2219_v10 = vpop.f32.mrf.mxu1 }
 0x311   :  { %v2220_v58 = vadd.f32 %v2219_v10, %v2207_v45 }
 0x318   :  { %v2221_v63 = vpop.f32.mrf.mxu1 }
 0x34d   :  { %v2232_v31 = vpop.f32.mrf.mxu2 }
 0x34e   :  { %v2233_v37 = vadd.f32 %v2232_v31, %v2220_v58 }
 0x355   :  { %v2234_v18 = vpop.f32.mrf.mxu2 }
 0x375   :  { %v2245_v50 = vpop.f32.mrf.mxu3 }
 0x376   :  { %v2246_v47 = vadd.f32 %v2245_v50, %v2233_v37 }
 0x378   :  { %v2249_v49 = vpack.c.bf16 %v2246_v47, %v2246_v47 }
 0x37a   :  { %2326 = vmatmul.bf16.vlgmr.msrb.gmra.mxu0 %v2249_v49 }
 0x37d   :  { %v2247_v51 = vpop.f32.mrf.mxu3 }
 0x3f7   :  { %v2327_v4 = vpop.f32.mrf.mxu0 }
 0x3f8   :  { %v2328_v25 = vadd.f32 %v3574_v48, %v2327_v4 }
 0x3fa   :  { %v2334_v29 = vsel %vm2333_vm12, %v2328_v25, -1e+30  ;;  %v2364_v40 = vsel %vm2363_vm0, %v2328_v25, -1e+30 }
 0x3fb   :  { %v2336_v41 = vsel %vm2335_vm13, %v2334_v29, -inf  ;;  %v2365_v52 = vsel %vm2335_vm13, %v2364_v40, -inf }
 0x3fc   :  { %2337 = vmax.xlane.f32.xlu2 %v2336_v41 }
 0x3ff   :  { %v2329_v1 = vpop.f32.mrf.mxu0 }
 0x404   :  { %2366 = vmax.xlane.f32.xlu2 %v2365_v52 }
 0x46f   :  { %v2338_v54 = vpop.xlane.xlu2 %2337 }
 0x470   :  { %v2339_v55 = vsub.f32 %v2334_v29, %v2338_v54 }
 0x472   :  { %v2340_v3 = vmul.f32 1.442695, %v2339_v55 }
 0x474   :  { %3589 = vpow2.f32 %v2340_v3 }
 0x477   :  { %v2367_v56 = vpop.xlane.xlu2 %2366 }
 0x478   :  { %v2368_v57 = vsub.f32 %v2364_v40, %v2367_v56 }
 0x47a   :  { %v3590_v26 = vpop.eup %3589  ;;  %v2369_v32 = vmul.f32 1.442695, %v2368_v57 }
 0x47b   :  { %v2342_v33 = vsel %vm2335_vm13, %v3590_v26, 0.0 }
 0x47c   :  { %3591 = vpow2.f32 %v2369_v32  ;;  %2343 = vadd.xlane.f32.xlu2 %v2342_v33 }
 0x482   :  { %v3592_v59 = vpop.eup %3591 }
 0x483   :  { %v2371_v15 = vsel %vm2335_vm13, %v3592_v59, 0.0 }
 0x484   :  { %2372 = vadd.xlane.f32.xlu2 %v2371_v15 }
 0x4ef   :  { %v2344_v42 = vpop.xlane.xlu2 %2343 }
 0x4f0   :  { %3593 = vrcp.f32 %v2344_v42  ;;  %v2356_v2 = vand.u32 2147483648, %v2344_v42  ;;  %v2354_v39 = vand.u32 2147483647, %v2344_v42  ;;  %vm2350_vm2 = vweird.f32 %v2344_v42 }
 0x4f2   :  { %v2357_v13 = vor.u32 1.1754944e-38, %v2356_v2  ;;  %vm2355_vm4 = vcmp.eq.f32.partialorder %v2354_v39, 8.507059e+37 }
 0x4f6   :  { %v3594_v5 = vpop.eup %3593 }
 0x4f7   :  { %v2346_v0 = vmul.f32 %v3594_v5, %v2344_v42  ;;  %v2373_v30 = vpop.xlane.xlu2 %2372  ;;  %vm2351_vm1 = vweird.f32 %v3594_v5 }
 0x4f8   :  { %3595 = vrcp.f32 %v2373_v30  ;;  %vm2352_vm3 = vmor %vm2350_vm2, %vm2351_vm1  ;;  %v2385_v19 = vand.u32 2147483648, %v2373_v30  ;;  %v2383_v60 = vand.u32 2147483647, %v2373_v30  ;;  %vm2379_vm6 = vweird.f32 %v2373_v30 }
 0x4f9   :  { %v2347_v53 = vsub.f32 1.0, %v2346_v0 }
 0x4fa   :  { %v2386_v22 = vor.u32 1.1754944e-38, %v2385_v19  ;;  %vm2384_vm8 = vcmp.eq.f32.partialorder %v2383_v60, 8.507059e+37 }
 0x4fb   :  { %v2348_v7 = vmul.f32 %v3594_v5, %v2347_v53 }
 0x4fd   :  { %v2349_v11 = vadd.f32 %v3594_v5, %v2348_v7 }
 0x4fe   :  { %v3596_v34 = vpop.eup %3595 }
 0x4ff   :  { %v2353_v46 = vsel %vm2352_vm3, %v3594_v5, %v2349_v11  ;;  %v2375_v35 = vmul.f32 %v3596_v34, %v2373_v30  ;;  %vm2380_vm5 = vweird.f32 %v3596_v34 }
 0x500   :  { %v2358_v6 = vsel %vm2355_vm4, %v2357_v13, %v2353_v46  ;;  %vm2381_vm7 = vmor %vm2379_vm6, %vm2380_vm5 }
 0x501   :  { %v2359_v9 = vmul.f32 %v3590_v26, %v2358_v6  ;;  %v2376_v61 = vsub.f32 1.0, %v2375_v35 }
 0x503   :  { %2360 = vst [vmem:[%s4212_s11] sm:$0x3] %v2359_v9  ;;  %v2377_v36 = vmul.f32 %v3596_v34, %v2376_v61 }
 0x505   :  { %v2378_v38 = vadd.f32 %v3596_v34, %v2377_v36 }
 0x507   :  { %v2382_v43 = vsel %vm2381_vm7, %v3596_v34, %v2378_v38 }
 0x508   :  { %v2387_v62 = vsel %vm2384_vm8, %v2386_v22, %v2382_v43 }
 0x509   :  { %v2388_v16 = vmul.f32 %v3592_v59, %v2387_v62 }
 0x50b   :  { %3332 = vst [vmem:[%s4212_s11 + $0x2] sm:$0x3] %v2388_v16 }
 0x50c   :  { %2403 = vsyncpa [#allocation3], 1 }

</bundles_post_ra>
